<compile_context>
chip_gen: v7x
topology: tpu7x:2x2x1
jax: 0.10.0
libtpu: 0.0.40
codegen_flags: <defaults>
</compile_context>

<pallas_src>
import functools

import jax
import jax.numpy as jnp
from jax import lax
from jax.experimental import pallas as pl
from jax.experimental.pallas import tpu as pltpu

NEG = 1e30  # same huge-negative masking constant as the PyTorch code


# ----------------------------------------------------------------------------
# Deterministic bias map / direction map / attention mask (plain JAX glue).
# ----------------------------------------------------------------------------
def generate_bias_map(h, w, nhead, eps=1e-10):
    hc = jnp.broadcast_to(jnp.arange(h, dtype=jnp.float32).reshape(h, 1), (h, w))
    wc = jnp.broadcast_to(jnp.arange(w, dtype=jnp.float32).reshape(1, w), (h, w))
    hw = h * w
    hcf = hc.reshape(hw, 1)
    wcf = wc.reshape(hw, 1)
    vec = jnp.stack([hcf - hcf.reshape(1, hw), wcf - wcf.reshape(1, hw)], axis=0)  # (2,hw,hw)
    norm = jnp.sqrt(jnp.sum(vec ** 2, axis=(-2, -1), keepdims=True))               # Frobenius per channel
    vec = (vec + eps) / (norm + eps)
    vec = jnp.concatenate([jnp.maximum(vec, 0.0), jnp.maximum(-vec, 0.0)], axis=0)  # (4,hw,hw)
    hq = hcf ** 2 + hcf.reshape(1, hw) ** 2 - 2.0 * (hcf @ hcf.reshape(1, hw))
    wq = wcf ** 2 + wcf.reshape(1, hw) ** 2 - 2.0 * (wcf @ wcf.reshape(1, hw))
    all_dist = jnp.sqrt(hq + wq)
    m = jnp.exp2(-jnp.arange(1, nhead + 1, dtype=jnp.float32).reshape(nhead, 1, 1) * 8.0 / nhead)
    bias_map = all_dist.reshape(1, hw, hw) * m                                      # (nhead,hw,hw)
    return bias_map, vec


def build_attention_mask(seq_len, pool_size, total_len):
    """(total_len, total_len) mask; zeros outside the real (L, L) region."""
    L = seq_len + pool_size
    m = jnp.ones((L, L), jnp.float32)
    m = m.at[seq_len:, :].set(0.0)
    m = m.at[:, seq_len:].set(0.0)
    m = m.at[seq_len:, seq_len:].set(jnp.eye(pool_size, dtype=jnp.float32))
    m = m.at[seq_len:, :seq_len].set(1.0)
    full = jnp.zeros((total_len, total_len), jnp.float32)
    return full.at[:L, :L].set(m)


# ----------------------------------------------------------------------------
# Pallas kernel.  Grid = (batch, head); the output block is resident across the
# head axis and carries the accumulated per-head output-projection contribution.
# ----------------------------------------------------------------------------
def euct_kernel(h_ref, wqkv_ref, wo_ref, bias_ref, vdir_ref, ln_ref,
                out_ref, *, d_head, ln_eps):
    n = pl.program_id(1)

    @pl.when(n == 0)
    def _init():
        out_ref[0] = jnp.zeros_like(out_ref[0])

    h = h_ref[0]                                        # (Lp, D) f32
    h_bf = h.astype(jnp.bfloat16)

    # Fused per-head projection: columns = [q_d | k_d | v_dir0 | v_dir1 | v_dir2 | v_dir3].
    qkv = jnp.dot(h_bf, wqkv_ref[0], preferred_element_type=jnp.float32)    # (Lp, 6d)
    qn = qkv[:, 0 * d_head:1 * d_head]
    kn = qkv[:, 1 * d_head:2 * d_head]
    vn = qkv[:, 2 * d_head:]                                                # (Lp, 4d) direction-major

    # Content scores; bias already contains m_bias + 2e30*(1-mask) (mask folded in).
    scores = lax.dot_general(qn.astype(jnp.bfloat16), kn.astype(jnp.bfloat16),
                             (((1,), (1,)), ((), ())),
                             preferred_element_type=jnp.float32)            # (Lp, Lp)
    logits = scores - bias_ref[0].astype(jnp.float32)

    # Single softmax == softmax(log_softmax(masked) - neg) of the reference
    # (the log_softmax shift is row-constant and cancels).
    m = jnp.max(logits, axis=-1, keepdims=True)
    e = jnp.exp(logits - m)
    na = e * pl.reciprocal(jnp.sum(e, axis=-1, keepdims=True), approx=True)  # (Lp, Lp)

    # 4-direction weighted value reduction as a single (Lp, 4Lp) @ (4Lp, d) matmul.
    sel = jnp.concatenate([vdir_ref[k] * na for k in range(4)],
                          axis=-1).astype(jnp.bfloat16)                     # (Lp, 4Lp)
    vstack = jnp.concatenate([vn[:, k * d_head:(k + 1) * d_head] for k in range(4)],
                             axis=0).astype(jnp.bfloat16)                   # (4Lp, d)
    red = jnp.dot(sel, vstack, preferred_element_type=jnp.float32)          # (Lp, d)

    # Accumulate this head's contribution to the output projection directly
    # into the resident f32 output block.
    out_ref[0] += jnp.dot(red.astype(jnp.bfloat16), wo_ref[0],
                          preferred_element_type=jnp.float32)               # (Lp, D)

    @pl.when(n == pl.num_programs(1) - 1)
    def _finalize():
        # dropout is identity at inference time.
        x = out_ref[0] + h
        mu = jnp.mean(x, axis=-1, keepdims=True)
        var = jnp.mean((x - mu) ** 2, axis=-1, keepdims=True)
        y = (x - mu) * lax.rsqrt(var + ln_eps)
        out_ref[0] = y * ln_ref[0:1, :] + ln_ref[1:2, :]


def _vmem_limit_bytes(Lp, D, d_head):
    bf, f4 = 2, 4
    resident = (2 * Lp * D * f4                 # h block (double-buffered)
                + 2 * Lp * D * f4               # resident output block
                + 2 * Lp * Lp * bf              # per-head bias block (double-buffered)
                + 2 * 4 * Lp * Lp * bf          # direction maps
                + 4 * D * 6 * d_head * bf       # per-head fused weights + output proj
                + 4 * d_head * D * bf)
    temporaries = 10 * Lp * Lp * f4 + 8 * Lp * d_head * f4
    est = 2 * (resident + temporaries)
    # Cap at 64 MiB so the request is valid on v7x (64 MiB physical VMEM) too.
    # TODO(synk): for very large L (est > 64 MiB) also tile the KV axis into
    # the grid with online-softmax accumulation instead of raising the cap.
    return int(min(max(est, 32 * 1024 * 1024), 64 * 1024 * 1024))


def euclidean_relative_attention(h, h_pooling, params, *, n_head, d_head, ln_eps=1e-12):
    B, H, W, D = h.shape
    _, P, _ = h_pooling.shape
    seq_len = H * W
    L = seq_len + P
    Lp = ((L + 127) // 128) * 128          # lane-dense (L, L) work; padded rows are masked out

    # --- activations: concat + pad -----------------------------------------
    h_cat = jnp.concatenate([h.reshape(B, seq_len, D), h_pooling], axis=1)   # (B, L, D)
    h_pad = jnp.zeros((B, Lp, D), jnp.float32).at[:, :L, :].set(h_cat)

    # --- L^2 constants: bias (with mask folded in) + direction maps, bf16 ---
    m_bias, vec_dir = generate_bias_map(H, W, n_head)
    mask = build_attention_mask(seq_len, P, Lp)                              # (Lp, Lp)
    bias = jnp.zeros((n_head, Lp, Lp), jnp.float32).at[:, :seq_len, :seq_len].set(m_bias)
    bias = (bias + (1.0 - mask)[None] * (2.0 * NEG)).astype(jnp.bfloat16)    # (n_head, Lp, Lp)
    vdir = (jnp.full((4, Lp, Lp), 0.25, jnp.float32)
            .at[:, :seq_len, :seq_len].set(vec_dir)).astype(jnp.bfloat16)    # (4, Lp, Lp)

    # --- weights: per-head fused [q|k|v0..v3] and per-head output proj ------
    wq_h = jnp.transpose(params['q'], (1, 0, 2))                             # (n, D, d)
    wk_h = jnp.transpose(params['k'], (1, 0, 2))                             # (n, D, d)
    wv_h = jnp.transpose(params['v'], (2, 0, 1, 3)).reshape(n_head, D, 4 * d_head)  # (n, D, 4d)
    wqkv = jnp.concatenate([wq_h, wk_h, wv_h], axis=-1).astype(jnp.bfloat16)  # (n, D, 6d)
    wo_h = jnp.transpose(params['o'], (1, 2, 0)).astype(jnp.bfloat16)         # (n, d, D)
    ln_gb = jnp.stack([params['ln_w'], params['ln_b']], axis=0).astype(jnp.float32)  # (2, D)

    kernel = functools.partial(euct_kernel, d_head=d_head, ln_eps=ln_eps)

    out = pl.pallas_call(
        kernel,
        out_shape=jax.ShapeDtypeStruct((B, Lp, D), jnp.float32),
        grid=(B, n_head),
        in_specs=[
            pl.BlockSpec((1, Lp, D), lambda b, n: (b, 0, 0)),          # h (resident across heads)
            pl.BlockSpec((1, D, 6 * d_head), lambda b, n: (n, 0, 0)),  # fused q|k|v weights, per head
            pl.BlockSpec((1, d_head, D), lambda b, n: (n, 0, 0)),      # output projection, per head
            pl.BlockSpec((1, Lp, Lp), lambda b, n: (n, 0, 0)),         # bias + mask, streamed per head
            pl.BlockSpec((4, Lp, Lp), lambda b, n: (0, 0, 0)),         # direction maps (resident)
            pl.BlockSpec((2, D), lambda b, n: (0, 0)),                 # layernorm gamma/beta
        ],
        out_specs=pl.BlockSpec((1, Lp, D), lambda b, n: (b, 0, 0)),    # resident accumulator across heads
        compiler_params=pltpu.CompilerParams(
            dimension_semantics=("parallel", "arbitrary"),
            vmem_limit_bytes=_vmem_limit_bytes(Lp, D, d_head),
        ),
    )(h_pad, wqkv, wo_h, bias, vdir, ln_gb)
    return out[:, :L, :]


# ----------------------------------------------------------------------------
# Pure-JAX reference (mirrors the PyTorch forward) for a correctness check.
# ----------------------------------------------------------------------------
def reference_forward(h, h_pooling, params, *, n_head, d_head, ln_eps=1e-12):
    B, H, W, D = h.shape
    _, P, _ = h_pooling.shape
    seq_len = H * W
    L = seq_len + P
    hc = jnp.concatenate([h.reshape(B, seq_len, D), h_pooling], axis=1)
    mask = build_attention_mask(seq_len, P, L)[None, None]
    q_head = jnp.einsum('bih,hnd->bind', hc, params['q'])
    k_head = jnp.einsum('bih,hnd->bind', hc, params['k'])
    v_head = jnp.einsum('bih,hknd->biknd', hc, params['v'])
    content = jnp.einsum('bind,bjnd->bnij', q_head, k_head)
    m_bias, vec_dir = generate_bias_map(H, W, n_head)
    m_bias_ = jnp.zeros((n_head, L, L), jnp.float32).at[:, :seq_len, :seq_len].set(m_bias)
    vec_dir_ = (jnp.ones((4, L, L), jnp.float32) / 4.0).at[:, :seq_len, :seq_len].set(vec_dir)
    alpha = content - m_bias_
    alpha = jax.nn.log_softmax(alpha - (1.0 - mask) * NEG, axis=-1) - (1.0 - mask) * NEG
    na = jax.nn.softmax(alpha, axis=-1)
    sel = jnp.einsum('kij,bnij->bknij', vec_dir_, na)
    reduced = jnp.einsum('bknij,bjknd->bind', sel, v_head)
    transformed = jnp.einsum('bind,hnd->bih', reduced, params['o'])
    x = transformed + hc
    mu = jnp.mean(x, axis=-1, keepdims=True)
    var = jnp.mean((x - mu) ** 2, axis=-1, keepdims=True)
    y = (x - mu) / jnp.sqrt(var + ln_eps)
    return y * params['ln_w'] + params['ln_b']


# ----------------------------------------------------------------------------
# Main
# ----------------------------------------------------------------------------
if __name__ == "__main__":
    # Small config consistent with the module's shapes.
    B, H, W = 2, 4, 4
    D_MODEL, N_HEAD, D_HEAD = 32, 2, 8
    POOL = 4
    LN_EPS = 1e-12

    key = jax.random.PRNGKey(0)
    k_h, k_p, k_q, k_k, k_v, k_o = jax.random.split(key, 6)

    h = jax.random.normal(k_h, (B, H, W, D_MODEL), dtype=jnp.float32)
    h_pooling = jax.random.normal(k_p, (B, POOL, D_MODEL), dtype=jnp.float32)

    scale = 0.05
    params = {
        'q': scale * jax.random.normal(k_q, (D_MODEL, N_HEAD, D_HEAD), dtype=jnp.float32),
        'k': scale * jax.random.normal(k_k, (D_MODEL, N_HEAD, D_HEAD), dtype=jnp.float32),
        'v': scale * jax.random.normal(k_v, (D_MODEL, 4, N_HEAD, D_HEAD), dtype=jnp.float32),
        'o': scale * jax.random.normal(k_o, (D_MODEL, N_HEAD, D_HEAD), dtype=jnp.float32),
        'ln_w': jnp.ones((D_MODEL,), jnp.float32),
        'ln_b': jnp.zeros((D_MODEL,), jnp.float32),
    }

    out = euclidean_relative_attention(h, h_pooling, params,
                                       n_head=N_HEAD, d_head=D_HEAD, ln_eps=LN_EPS)
    out = jax.block_until_ready(out)

    ref = reference_forward(h, h_pooling, params,
                            n_head=N_HEAD, d_head=D_HEAD, ln_eps=LN_EPS)
    ref = jax.block_until_ready(ref)

    assert out.shape == (B, H * W + POOL, D_MODEL)
    assert bool(jnp.all(jnp.isfinite(out)))
    max_diff = float(jnp.max(jnp.abs(out - ref)))
    assert bool(jnp.allclose(out, ref, atol=2e-2, rtol=2e-2)), f"max abs diff {max_diff}"

    print("KERNEL_OK")
</pallas_src>

<mosaic_0001>
module attributes {stable_mosaic.version = 11 : i64} {
  func.func @euct_kernel(%arg0: i32, %arg1: i32, %arg2: memref<1x128x32xf32, #tpu.memory_space<vmem>>, %arg3: memref<1x32x48xbf16, #tpu.memory_space<vmem>>, %arg4: memref<1x8x32xbf16, #tpu.memory_space<vmem>>, %arg5: memref<1x128x128xbf16, #tpu.memory_space<vmem>>, %arg6: memref<4x128x128xbf16, #tpu.memory_space<vmem>>, %arg7: memref<2x32xf32, #tpu.memory_space<vmem>>, %arg8: memref<1x128x32xf32, #tpu.memory_space<vmem>>) attributes {dimension_semantics = [#tpu.dimension_semantics<parallel>, #tpu.dimension_semantics<arbitrary>], iteration_bounds = array<i64: 2, 2>, scalar_prefetch = 0 : i64, scratch_operands = 0 : i64, tpu.core_type = #tpu.core_type<tc>, window_params = [{transform_indices = @transform_0, window_bounds = array<i64: 1, 128, 32>}, {transform_indices = @transform_1, window_bounds = array<i64: 1, 32, 48>}, {transform_indices = @transform_2, window_bounds = array<i64: 1, 8, 32>}, {transform_indices = @transform_3, window_bounds = array<i64: 1, 128, 128>}, {pipeline_mode = #tpu.pipeline_mode<synchronous>, transform_indices = @transform_4, window_bounds = array<i64: 4, 128, 128>}, {pipeline_mode = #tpu.pipeline_mode<synchronous>, transform_indices = @transform_5, window_bounds = array<i64: 2, 32>}, {transform_indices = @transform_6, window_bounds = array<i64: 1, 128, 32>}]} {
    %c0_i32 = arith.constant 0 : i32
    %0 = arith.cmpi eq, %arg1, %c0_i32 : i32
    %1 = arith.extui %0 : i1 to i32
    %c0_i32_0 = arith.constant 0 : i32
    %2 = arith.cmpi ne, %1, %c0_i32_0 : i32
    scf.if %2 {
      %cst_33 = arith.constant 0.000000e+00 : f32
      %67 = vector.broadcast %cst_33 : f32 to vector<128x32xf32>
      %c0_34 = arith.constant 0 : index
      %c0_35 = arith.constant 0 : index
      %c0_36 = arith.constant 0 : index
      %68 = vector.load %arg8[%c0_34, %c0_35, %c0_36] : memref<1x128x32xf32, #tpu.memory_space<vmem>>, vector<1x128x32xf32>
      %69 = vector.shape_cast %68 : vector<1x128x32xf32> to vector<128x32xf32>
      %70 = vector.shape_cast %67 : vector<128x32xf32> to vector<1x128x32xf32>
      tpu.vector_store %arg8[%c0_34, %c0_35, %c0_36], %70 {strides = array<i32>} : memref<1x128x32xf32, #tpu.memory_space<vmem>>, vector<1x128x32xf32>,
    } else {
    }
    %c0 = arith.constant 0 : index
    %c0_1 = arith.constant 0 : index
    %c0_2 = arith.constant 0 : index
    %3 = vector.load %arg2[%c0, %c0_1, %c0_2] : memref<1x128x32xf32, #tpu.memory_space<vmem>>, vector<1x128x32xf32>
    %4 = vector.shape_cast %3 : vector<1x128x32xf32> to vector<128x32xf32>
    %5 = arith.truncf %4 : vector<128x32xf32> to vector<128x32xbf16>
    %c0_3 = arith.constant 0 : index
    %c0_4 = arith.constant 0 : index
    %c0_5 = arith.constant 0 : index
    %6 = vector.load %arg3[%c0_3, %c0_4, %c0_5] : memref<1x32x48xbf16, #tpu.memory_space<vmem>>, vector<1x32x48xbf16>
    %7 = vector.shape_cast %6 : vector<1x32x48xbf16> to vector<32x48xbf16>
    %cst = arith.constant dense<0.000000e+00> : vector<128x48xf32>
    %8 = tpu.matmul %5, %7, %cst {dimension_numbers = #tpu.dot_dimension_numbers<[1], [0], [0], [1], [0, 0, 1, 1], [], []>} : vector<128x32xbf16>, vector<32x48xbf16>, vector<128x48xf32> -> vector<128x48xf32>
    %9 = vector.extract_strided_slice %8 {offsets = [0, 0], sizes = [128, 8], strides = [1, 1]} : vector<128x48xf32> to vector<128x8xf32>
    %10 = vector.extract_strided_slice %8 {offsets = [0, 8], sizes = [128, 8], strides = [1, 1]} : vector<128x48xf32> to vector<128x8xf32>
    %11 = vector.extract_strided_slice %8 {offsets = [0, 16], sizes = [128, 32], strides = [1, 1]} : vector<128x48xf32> to vector<128x32xf32>
    %12 = arith.truncf %9 : vector<128x8xf32> to vector<128x8xbf16>
    %13 = arith.truncf %10 : vector<128x8xf32> to vector<128x8xbf16>
    %cst_6 = arith.constant dense<0.000000e+00> : vector<128x128xf32>
    %14 = tpu.matmul %12, %13, %cst_6 {dimension_numbers = #tpu.dot_dimension_numbers<[1], [1], [0], [0], [0, 0, 1, 0], [], []>} : vector<128x8xbf16>, vector<128x8xbf16>, vector<128x128xf32> -> vector<128x128xf32>
    %c0_7 = arith.constant 0 : index
    %c0_8 = arith.constant 0 : index
    %c0_9 = arith.constant 0 : index
    %15 = vector.load %arg5[%c0_7, %c0_8, %c0_9] : memref<1x128x128xbf16, #tpu.memory_space<vmem>>, vector<1x128x128xbf16>
    %16 = vector.shape_cast %15 : vector<1x128x128xbf16> to vector<128x128xbf16>
    %17 = arith.extf %16 : vector<128x128xbf16> to vector<128x128xf32>
    %18 = arith.subf %14, %17 : vector<128x128xf32>
    %cst_10 = arith.constant dense<0xFF800000> : vector<128xf32>
    %19 = vector.multi_reduction <maximumf>, %18, %cst_10 [1] : vector<128x128xf32> to vector<128xf32>
    %20 = vector.shape_cast %19 : vector<128xf32> to vector<128x1xf32>
    %21 = vector.broadcast %20 : vector<128x1xf32> to vector<128x128xf32>
    %22 = arith.subf %18, %21 : vector<128x128xf32>
    %23 = math.exp %22 : vector<128x128xf32>
    %cst_11 = arith.constant dense<0.000000e+00> : vector<128xf32>
    %24 = vector.multi_reduction <add>, %23, %cst_11 [1] : vector<128x128xf32> to vector<128xf32>
    %25 = vector.shape_cast %24 : vector<128xf32> to vector<128x1xf32>
    %26 = tpu.reciprocal %25 {approx = true} : vector<128x1xf32> -> vector<128x1xf32>
    %27 = vector.broadcast %26 : vector<128x1xf32> to vector<128x128xf32>
    %28 = arith.mulf %23, %27 : vector<128x128xf32>
    %c0_12 = arith.constant 0 : index
    %c0_13 = arith.constant 0 : index
    %c0_14 = arith.constant 0 : index
    %29 = vector.load %arg6[%c0_12, %c0_13, %c0_14] : memref<4x128x128xbf16, #tpu.memory_space<vmem>>, vector<1x128x128xbf16>
    %30 = vector.shape_cast %29 : vector<1x128x128xbf16> to vector<128x128xbf16>
    %31 = arith.extf %30 : vector<128x128xbf16> to vector<128x128xf32>
    %32 = arith.mulf %31, %28 : vector<128x128xf32>
    %c1 = arith.constant 1 : index
    %c0_15 = arith.constant 0 : index
    %c0_16 = arith.constant 0 : index
    %33 = vector.load %arg6[%c1, %c0_15, %c0_16] : memref<4x128x128xbf16, #tpu.memory_space<vmem>>, vector<1x128x128xbf16>
    %34 = vector.shape_cast %33 : vector<1x128x128xbf16> to vector<128x128xbf16>
    %35 = arith.extf %34 : vector<128x128xbf16> to vector<128x128xf32>
    %36 = arith.mulf %35, %28 : vector<128x128xf32>
    %c2 = arith.constant 2 : index
    %c0_17 = arith.constant 0 : index
    %c0_18 = arith.constant 0 : index
    %37 = vector.load %arg6[%c2, %c0_17, %c0_18] : memref<4x128x128xbf16, #tpu.memory_space<vmem>>, vector<1x128x128xbf16>
    %38 = vector.shape_cast %37 : vector<1x128x128xbf16> to vector<128x128xbf16>
    %39 = arith.extf %38 : vector<128x128xbf16> to vector<128x128xf32>
    %40 = arith.mulf %39, %28 : vector<128x128xf32>
    %c3 = arith.constant 3 : index
    %c0_19 = arith.constant 0 : index
    %c0_20 = arith.constant 0 : index
    %41 = vector.load %arg6[%c3, %c0_19, %c0_20] : memref<4x128x128xbf16, #tpu.memory_space<vmem>>, vector<1x128x128xbf16>
    %42 = vector.shape_cast %41 : vector<1x128x128xbf16> to vector<128x128xbf16>
    %43 = arith.extf %42 : vector<128x128xbf16> to vector<128x128xf32>
    %44 = arith.mulf %43, %28 : vector<128x128xf32>
    %45 = tpu.concatenate %32, %36, %40, %44 in 1 : vector<128x128xf32>, vector<128x128xf32>, vector<128x128xf32>, vector<128x128xf32> -> vector<128x512xf32>
    %46 = arith.truncf %45 : vector<128x512xf32> to vector<128x512xbf16>
    %47 = vector.extract_strided_slice %11 {offsets = [0, 0], sizes = [128, 8], strides = [1, 1]} : vector<128x32xf32> to vector<128x8xf32>
    %48 = vector.extract_strided_slice %11 {offsets = [0, 8], sizes = [128, 8], strides = [1, 1]} : vector<128x32xf32> to vector<128x8xf32>
    %49 = vector.extract_strided_slice %11 {offsets = [0, 16], sizes = [128, 8], strides = [1, 1]} : vector<128x32xf32> to vector<128x8xf32>
    %50 = vector.extract_strided_slice %11 {offsets = [0, 24], sizes = [128, 8], strides = [1, 1]} : vector<128x32xf32> to vector<128x8xf32>
    %51 = tpu.concatenate %47, %48, %49, %50 in 0 : vector<128x8xf32>, vector<128x8xf32>, vector<128x8xf32>, vector<128x8xf32> -> vector<512x8xf32>
    %52 = arith.truncf %51 : vector<512x8xf32> to vector<512x8xbf16>
    %cst_21 = arith.constant dense<0.000000e+00> : vector<128x8xf32>
    %53 = tpu.matmul %46, %52, %cst_21 {dimension_numbers = #tpu.dot_dimension_numbers<[1], [0], [0], [1], [0, 0, 1, 1], [], []>} : vector<128x512xbf16>, vector<512x8xbf16>, vector<128x8xf32> -> vector<128x8xf32>
    %c0_22 = arith.constant 0 : index
    %c0_23 = arith.constant 0 : index
    %c0_24 = arith.constant 0 : index
    %54 = vector.load %arg8[%c0_22, %c0_23, %c0_24] : memref<1x128x32xf32, #tpu.memory_space<vmem>>, vector<1x128x32xf32>
    %55 = vector.shape_cast %54 : vector<1x128x32xf32> to vector<128x32xf32>
    %56 = arith.truncf %53 : vector<128x8xf32> to vector<128x8xbf16>
    %c0_25 = arith.constant 0 : index
    %c0_26 = arith.constant 0 : index
    %c0_27 = arith.constant 0 : index
    %57 = vector.load %arg4[%c0_25, %c0_26, %c0_27] : memref<1x8x32xbf16, #tpu.memory_space<vmem>>, vector<1x8x32xbf16>
    %58 = vector.shape_cast %57 : vector<1x8x32xbf16> to vector<8x32xbf16>
    %cst_28 = arith.constant dense<0.000000e+00> : vector<128x32xf32>
    %59 = tpu.matmul %56, %58, %cst_28 {dimension_numbers = #tpu.dot_dimension_numbers<[1], [0], [0], [1], [0, 0, 1, 1], [], []>} : vector<128x8xbf16>, vector<8x32xbf16>, vector<128x32xf32> -> vector<128x32xf32>
    %60 = arith.addf %55, %59 : vector<128x32xf32>
    %c0_29 = arith.constant 0 : index
    %c0_30 = arith.constant 0 : index
    %c0_31 = arith.constant 0 : index
    %61 = vector.load %arg8[%c0_29, %c0_30, %c0_31] : memref<1x128x32xf32, #tpu.memory_space<vmem>>, vector<1x128x32xf32>
    %62 = vector.shape_cast %61 : vector<1x128x32xf32> to vector<128x32xf32>
    %63 = vector.shape_cast %60 : vector<128x32xf32> to vector<1x128x32xf32>
    tpu.vector_store %arg8[%c0_29, %c0_30, %c0_31], %63 {strides = array<i32>} : memref<1x128x32xf32, #tpu.memory_space<vmem>>, vector<1x128x32xf32>,
    %c1_i32 = arith.constant 1 : i32
    %64 = arith.cmpi eq, %arg1, %c1_i32 : i32
    %65 = arith.extui %64 : i1 to i32
    %c0_i32_32 = arith.constant 0 : i32
    %66 = arith.cmpi ne, %65, %c0_i32_32 : i32
    scf.if %66 {
      %c0_33 = arith.constant 0 : index
      %c0_34 = arith.constant 0 : index
      %c0_35 = arith.constant 0 : index
      %67 = vector.load %arg8[%c0_33, %c0_34, %c0_35] : memref<1x128x32xf32, #tpu.memory_space<vmem>>, vector<1x128x32xf32>
      %68 = vector.shape_cast %67 : vector<1x128x32xf32> to vector<128x32xf32>
      %69 = arith.addf %68, %4 : vector<128x32xf32>
      %cst_36 = arith.constant dense<0.000000e+00> : vector<128xf32>
      %70 = vector.multi_reduction <add>, %69, %cst_36 [1] : vector<128x32xf32> to vector<128xf32>
      %71 = vector.shape_cast %70 : vector<128xf32> to vector<128x1xf32>
      %cst_37 = arith.constant 3.200000e+01 : f32
      %72 = vector.broadcast %cst_37 : f32 to vector<128x1xf32>
      %73 = arith.divf %71, %72 : vector<128x1xf32>
      %74 = vector.broadcast %73 : vector<128x1xf32> to vector<128x32xf32>
      %75 = arith.subf %69, %74 : vector<128x32xf32>
      %76 = arith.mulf %75, %75 : vector<128x32xf32>
      %cst_38 = arith.constant dense<0.000000e+00> : vector<128xf32>
      %77 = vector.multi_reduction <add>, %76, %cst_38 [1] : vector<128x32xf32> to vector<128xf32>
      %78 = vector.shape_cast %77 : vector<128xf32> to vector<128x1xf32>
      %cst_39 = arith.constant 3.200000e+01 : f32
      %79 = vector.broadcast %cst_39 : f32 to vector<128x1xf32>
      %80 = arith.divf %78, %79 : vector<128x1xf32>
      %81 = vector.broadcast %73 : vector<128x1xf32> to vector<128x32xf32>
      %82 = arith.subf %69, %81 : vector<128x32xf32>
      %cst_40 = arith.constant 9.99999996E-13 : f32
      %83 = vector.broadcast %cst_40 : f32 to vector<128x1xf32>
      %84 = arith.addf %80, %83 : vector<128x1xf32>
      %85 = math.rsqrt %84 : vector<128x1xf32>
      %86 = vector.broadcast %85 : vector<128x1xf32> to vector<128x32xf32>
      %87 = arith.mulf %82, %86 : vector<128x32xf32>
      %c0_41 = arith.constant 0 : index
      %c0_42 = arith.constant 0 : index
      %88 = vector.load %arg7[%c0_41, %c0_42] : memref<2x32xf32, #tpu.memory_space<vmem>>, vector<1x32xf32>
      %89 = vector.broadcast %88 : vector<1x32xf32> to vector<128x32xf32>
      %90 = arith.mulf %87, %89 : vector<128x32xf32>
      %c1_43 = arith.constant 1 : index
      %c0_44 = arith.constant 0 : index
      %91 = vector.load %arg7[%c1_43, %c0_44] : memref<2x32xf32, #tpu.memory_space<vmem>>, vector<1x32xf32>
      %92 = vector.broadcast %91 : vector<1x32xf32> to vector<128x32xf32>
      %93 = arith.addf %90, %92 : vector<128x32xf32>
      %c0_45 = arith.constant 0 : index
      %c0_46 = arith.constant 0 : index
      %c0_47 = arith.constant 0 : index
      %94 = vector.load %arg8[%c0_45, %c0_46, %c0_47] : memref<1x128x32xf32, #tpu.memory_space<vmem>>, vector<1x128x32xf32>
      %95 = vector.shape_cast %94 : vector<1x128x32xf32> to vector<128x32xf32>
      %96 = vector.shape_cast %93 : vector<128x32xf32> to vector<1x128x32xf32>
      tpu.vector_store %arg8[%c0_45, %c0_46, %c0_47], %96 {strides = array<i32>} : memref<1x128x32xf32, #tpu.memory_space<vmem>>, vector<1x128x32xf32>,
    } else {
    }
    return
  }
  func.func @transform_0(%arg0: i32, %arg1: i32) -> (i32, i32, i32) {
    %c0_i32 = arith.constant 0 : i32
    %c0_i32_0 = arith.constant 0 : i32
    %c0_i32_1 = arith.constant 0 : i32
    return %arg0, %c0_i32, %c0_i32_0 : i32, i32, i32
  }
  func.func @transform_1(%arg0: i32, %arg1: i32) -> (i32, i32, i32) {
    %c0_i32 = arith.constant 0 : i32
    %c0_i32_0 = arith.constant 0 : i32
    %c0_i32_1 = arith.constant 0 : i32
    return %arg1, %c0_i32, %c0_i32_0 : i32, i32, i32
  }
  func.func @transform_2(%arg0: i32, %arg1: i32) -> (i32, i32, i32) {
    %c0_i32 = arith.constant 0 : i32
    %c0_i32_0 = arith.constant 0 : i32
    %c0_i32_1 = arith.constant 0 : i32
    return %arg1, %c0_i32, %c0_i32_0 : i32, i32, i32
  }
  func.func @transform_3(%arg0: i32, %arg1: i32) -> (i32, i32, i32) {
    %c0_i32 = arith.constant 0 : i32
    %c0_i32_0 = arith.constant 0 : i32
    %c0_i32_1 = arith.constant 0 : i32
    return %arg1, %c0_i32, %c0_i32_0 : i32, i32, i32
  }
  func.func @transform_4(%arg0: i32, %arg1: i32) -> (i32, i32, i32) {
    %c0_i32 = arith.constant 0 : i32
    %c0_i32_0 = arith.constant 0 : i32
    %c0_i32_1 = arith.constant 0 : i32
    %c0_i32_2 = arith.constant 0 : i32
    return %c0_i32, %c0_i32_0, %c0_i32_1 : i32, i32, i32
  }
  func.func @transform_5(%arg0: i32, %arg1: i32) -> (i32, i32) {
    %c0_i32 = arith.constant 0 : i32
    %c0_i32_0 = arith.constant 0 : i32
    %c0_i32_1 = arith.constant 0 : i32
    return %c0_i32, %c0_i32_0 : i32, i32
  }
  func.func @transform_6(%arg0: i32, %arg1: i32) -> (i32, i32, i32) {
    %c0_i32 = arith.constant 0 : i32
    %c0_i32_0 = arith.constant 0 : i32
    %c0_i32_1 = arith.constant 0 : i32
    return %arg0, %c0_i32, %c0_i32_0 : i32, i32, i32
  }
}

</mosaic_0001>

<bundles_post_ra>
// kernel: tpu_custom_call.1
= control target key start
LH: loop header
LB: loop body
LE: loop exit
PB: predicated region body
PF: predicated region fallthrough
CT: control target
= control target key end

     0   :  { %s4386_s0 = inlined_call_operand.vmem [shape: f32[2,128,32], index: 0, kind: input, shape index: {}]   ;;  %s4387_s1 = inlined_call_operand.vmem [shape: bf16[2,32,48], index: 1, kind: input, shape index: {}]   ;;  %s4388_s2 = inlined_call_operand.vmem [shape: bf16[2,8,32], index: 2, kind: input, shape index: {}]   ;;  %s4389_s3 = inlined_call_operand.hbm [shape: bf16[2,128,128], index: 3, kind: input, shape index: {}]   ;;  %s4390_s4 = inlined_call_operand.vmem [shape: bf16[4,128,128], index: 4, kind: input, shape index: {}]   ;;  %s4391_s5 = inlined_call_operand.vmem [shape: f32[2,32], index: 5, kind: input, shape index: {}]   ;;  %s4392_s6 = inlined_call_operand.vmem [shape: f32[2,128,32], index: 6, kind: output, shape index: {}]  }
   0x1   :  { %4403 = sst [smem:[#allocation16_spill]] %s4389_s3 }
   0x2   :  { %11 = vsyncpa [#allocation3], 0 }
   0x3   :  { %13 = vsyncpa [#allocation3 + $0x1], 0  ;;  %s3210_s21 = smov 0   ;;  %s3212_s22 = smov 0  }
   0x4   :  { %s3214_s23 = smov 0   ;;  %s3216_s24 = smov 0  }
   0x5   :  { %s3218_s25 = smov 0   ;;  %s3220_s26 = smov 0  }
   0x6   :  { %s3222_s27 = smov 0   ;;  %s3224_s28 = smov 0  }
   0x7 LB: > { %s2219_s29 = sadd.s32 4294967295, %s3166_s28   ;;  %s28_s30 = sadd.s32 1, %s3158_s26  ;;  %s3166_s28 = sphi %s3224_s28, %s19_s28   ;;  %s3162_s27 = sphi %s3222_s27, %s4436_s27   ;;  %s3158_s26 = sphi %s3220_s26, %s4435_s26   ;;  %s3154_s25 = sphi %s3218_s25, %s4434_s25   ;;  %s3150_s24 = sphi %s3216_s24, %s4433_s24   ;;  %s3146_s23 = sphi %s3214_s23, %s4432_s23   ;;  %s3142_s22 = sphi %s3212_s22, %s4431_s22   ;;  %s3138_s21 = sphi %s3210_s21, %s4430_s21  }
   0x8   : > { %p29_p0 = scmp.ge.s32.totalorder %s28_s30, 2  ;;  %s31_s7 = sadd.s32 1, %s3162_s27 }
   0x9   : > { %s116_s8 = sadd.s32 1, %s3146_s23  ;;  %p123_p1 = scmp.ne.s32.totalorder %s3146_s23, %s3142_s22 }
   0xa   : > { %s4438_s30 = smov (%p29_p0, %s28_s30), 0  ;;  %s4440_s7 = smov (!%p29_p0, %s31_s7), %s3162_s27 }
   0xb   : > { %s113_s9 = ssub.s32 %s3158_s26, %s4438_s30  ;;  %p124_p2 = scmp.eq.s32.totalorder %s3166_s28, 0 }
   0xc   : > { %p33_p3 = scmp.ge.s32.totalorder %s4440_s7, 2  ;;  %p114_p4 = scmp.eq.s32.totalorder %s113_s9, 0 }
   0xd   : > { %p3260_p5 = por %p124_p2, %p123_p1  ;;  %p129_p6 = scmp.ne.s32.totalorder %s3142_s22, %s3138_s21 }
   0xe   : > { %s4442_s7 = smov (%p33_p3, %s4440_s7), 0  ;;  %p130_p7 = scmp.eq.s32.totalorder %s2219_s29, 0 }
   0xf   : > { %4405 = sst [smem:[#allocation5_spill]] %s4442_s7  ;;  %p2781_p8 = scmp.lt.s32.totalorder %s3166_s28, 4 }
  0x10   : > { %s3268_s11 = scalar_select %p114_p4, %s3146_s23, %s116_s8  }
  0x11   : > { %s250_s12 = sand.u32 1, %s3146_s23   ;;  %p3272_p9 = por %p130_p7, %p129_p6 }
  0x12   : > { %s2223_s14 = sshll.u32 %s250_s12, 6  ;;  %s2315_s15 = sshll.u32 %s3158_s26, 10 }
  0x13   : > { %s4407_s3 = sld [smem:[#allocation16_spill]]  ;;  %s254_s19 = scalar_lea.vmem [#allocation2], %s2223_s14 }
  0x14   : > { %s261_s20 = sshll.u32 %s254_s19, 4  ;;  %p3284_p10 = pnand %p2781_p8, %p3260_p5  ;;  %s3288_s20 = int_to_ptr.vmem [resolvable:$true] %s261_s20 }
  0x15   : > { %s3290_s29 = scalar_lea.sflag [#allocation3], %s250_s12 }
  0x16   : > { %p3072_p12 = pneg %p3284_p10 }
  0x19   : > { %s3280_s18 = scalar_lea.hbm %s4407_s3, %s2315_s15  ;;  %s3075_s14 = scalar_lea.hbm %s4407_s3, 2048 }
  0x1a   : > { %s3070_s8 = scalar_lea.hbm %s3280_s18, 1024  ;;  %p3076_p1 = scmp.lt.u32.totalorder %s3280_s18, %s4407_s3 }
  0x1b   : > { %p3071_p11 = scmp.ne.s32.totalorder %s3280_s18, %s3070_s8  ;;  %p3077_p2 = scmp.lt.u32.totalorder %s3075_s14, %s3070_s8 }
  0x1c   : > { %p3079_p4 = scmp.lt.u32.totalorder %s3070_s8, %s3280_s18 }
  0x1d   : > { %p3073_p13 = pnand %p3072_p12, %p3071_p11  ;;  %p3078_p3 = por %p3077_p2, %p3076_p1 }
  0x1f   : > { %p3074_p0 = pneg %p3073_p13  ;;  %p3080_p5 = por %p3079_p4, %p3078_p3 }
  0x21   : > { %p3081_p6 = pnand %p3080_p5, %p3074_p0 }
  0x23   : > { %3084 = shalt.err (!%p3081_p6)
}
  0x24   : > { %s3085_s12 = scalar_lea.vmem %s3288_s20, 1024  ;;  %s3168_s17 = smov [#allocation2]  }
  0x25   : > { %p3086_p7 = scmp.ne.s32.totalorder %s3288_s20, %s3085_s12  ;;  %s3090_s19 = sshll.u32 %s3168_s17, 4  ;;  %s3091_s19 = int_to_ptr.vmem [resolvable:$false] %s3090_s19 }
  0x26   : > { %s3092_s9 = scalar_lea.vmem %s3091_s19, 2048  ;;  %p3093_p13 = scmp.lt.s32.totalorder %s3288_s20, %s3091_s19 }
  0x27   : > { %p3088_p8 = pnand %p3086_p7, %p3072_p12  ;;  %p3094_p1 = scmp.lt.s32.totalorder %s3092_s9, %s3085_s12 }
  0x29   : > { %p3089_p11 = pneg %p3088_p8  ;;  %p3095_p2 = por %p3094_p1, %p3093_p13 }
  0x2b   : > { %p3096_p3 = pnand %p3095_p2, %p3089_p11 }
  0x2d   : > { %3099 = shalt.err (!%p3096_p3)
}
  0x2e   : > { %s3169_s8 = smov 64   ;;  %s3170_s10 = smov 4  }
  0x2f   : > { %2780 = dma.hbm_to_vmem [thread:$0]  (!%p3284_p10), %s3280_s18, 1024, %s3288_s20, %s3290_s29, %s3169_s8, %s3169_s8, %s3170_s10  }
  0x30   : > { %p2226_p12 = scmp.ge.s32.totalorder %s3166_s28, 1  ;;  %p269_p0 = scmp.lt.s32.totalorder %s3166_s28, 5 }
  0x32   : > { %p270_p4 = pnand %p2226_p12, %p269_p0 }
  0x34   : > { %273 = sbr.rel (%p270_p4) target bundleno = 1914 (0x77a), region = 44 }
  0x3b   : > { %s275_s14 = sand.u32 1, %s3142_s22  }
  0x3c   : > { %s2227_s15 = sshll.u32 %s275_s14, 6  ;;  %s276_s16 = scalar_lea.sflag [#allocation3], %s275_s14 }
  0x3d   : > { %s3321_s12 = scalar_lea.vmem [#allocation2], %s2227_s15 }
  0x3e   : > { %3133 = dma.done.wait (%p3272_p9), %s276_s16, 1024  }
  0x3f   : > { %3135 = vsyncadd (%p3272_p9), %s276_s16, 4294966272  ;;  %p322_p10 = scmp.lt.s32.totalorder %s3154_s25, 1  ;;  %p327_p5 = scmp.lt.s32.totalorder %s3150_s24, 1 }
  0x40   : > { %p2235_p9 = scmp.ne.s32.totalorder %s3150_s24, 0 }
  0x41   : > { %s4444_s25 = smov (!%p322_p10, %s3154_s25), 1  ;;  %vm346_vm0 = vcmask (!%p2235_p9), 261120   ;;  %v3171_v0 = vmov (!%p2235_p9), 0.0  }
  0x42   : > { %s328_s18 = scalar_select %p327_p5, %s3150_s24, 1 }
  0x43   : > { %s2316_s20 = sshll.u32 %s4444_s25, 7  ;;  %345 = sbr.rel (%p2235_p9) target bundleno = 79 (0x4f), region = 52 }
  0x44   : > { %s3334_s17 = scalar_lea.vmem %s4386_s0, %s2316_s20  ;;  %s2317_s19 = sshll.u32 %s328_s18, 4 }
  0x45   : > { %s331_s13 = scalar_lea.vmem %s4387_s1, %s2317_s19  ;;  %s2232_s10 = sshll.u32 %s328_s18, 2 }
  0x46   : > { %s3342_s16 = scalar_lea.vmem %s4388_s2, %s2232_s10  ;;  %s3347_s25 = scalar_lea.vmem %s4392_s6, %s2316_s20 }
  0x47   : > { %347 = vst.msk [vmem:[%s3347_s25] sm:$0xff] (!%p2235_p9), %vm346_vm0, %v3171_v0  ;;  %348 = vst.msk [vmem:[%s3347_s25 + $0x8] sm:$0xff] (!%p2235_p9), %vm346_vm0, %v3171_v0 }
  0x48   : > { %349 = vst.msk [vmem:[%s3347_s25 + $0x10] sm:$0xff] (!%p2235_p9), %vm346_vm0, %v3171_v0  ;;  %350 = vst.msk [vmem:[%s3347_s25 + $0x18] sm:$0xff] (!%p2235_p9), %vm346_vm0, %v3171_v0 }
  0x49   : > { %351 = vst.msk [vmem:[%s3347_s25 + $0x20] sm:$0xff] (!%p2235_p9), %vm346_vm0, %v3171_v0  ;;  %352 = vst.msk [vmem:[%s3347_s25 + $0x28] sm:$0xff] (!%p2235_p9), %vm346_vm0, %v3171_v0 }
  0x4a   : > { %353 = vst.msk [vmem:[%s3347_s25 + $0x30] sm:$0xff] %vm346_vm0, %v3171_v0  ;;  %354 = vst.msk [vmem:[%s3347_s25 + $0x38] sm:$0xff] %vm346_vm0, %v3171_v0 }
  0x4b   : > { %355 = vst.msk [vmem:[%s3347_s25 + $0x40] sm:$0xff] %vm346_vm0, %v3171_v0  ;;  %356 = vst.msk [vmem:[%s3347_s25 + $0x48] sm:$0xff] %vm346_vm0, %v3171_v0 }
  0x4c   : > { %357 = vst.msk [vmem:[%s3347_s25 + $0x50] sm:$0xff] %vm346_vm0, %v3171_v0  ;;  %358 = vst.msk [vmem:[%s3347_s25 + $0x58] sm:$0xff] %vm346_vm0, %v3171_v0 }
  0x4d   : > { %359 = vst.msk [vmem:[%s3347_s25 + $0x60] sm:$0xff] %vm346_vm0, %v3171_v0  ;;  %360 = vst.msk [vmem:[%s3347_s25 + $0x68] sm:$0xff] %vm346_vm0, %v3171_v0 }
  0x4e   : > { %361 = vst.msk [vmem:[%s3347_s25 + $0x70] sm:$0xff] %vm346_vm0, %v3171_v0  ;;  %362 = vst.msk [vmem:[%s3347_s25 + $0x78] sm:$0xff] %vm346_vm0, %v3171_v0 }
  0x4f PF: > { %v2972_v1 = vld [vmem:[%s331_s13] sm:$0xff]   ;;  %v2973_v2 = vld [vmem:[%s331_s13 + $0x8] sm:$0xff]   ;;  %vm403_vm1 = vcmask 261120   ;;  %v3391_v6 = vld [vmem:[%s3334_s17 + $0x10] sm:$0xff]  ;;  %vm557_vm2 = vcmask 64512   ;;  %s3172_s3 = smov 120  }
  0x50   : > { %2680 = vmatprep.subr.bf16.mxu0 %v2972_v1  ;;  %v3383_v3 = vld [vmem:[%s3334_s17] sm:$0xff]  ;;  %v3386_v4 = vld [vmem:[%s3334_s17 + $0x8] sm:$0xff]  ;;  %v3394_v7 = vld [vmem:[%s3334_s17 + $0x18] sm:$0xff]  ;;  %s3173_s7 = smov 104   ;;  %s3174_s18 = smov 112   ;;  %vm1669_vm3 = vcmask 1043456  }
  0x51   : > { %2681 = vmatpush3.bf16.msra.mxu0 %v2972_v1  ;;  %v379_v5 = vpack.c.bf16 %v3386_v4, %v3383_v3  ;;  %v3397_v8 = vld [vmem:[%s3334_s17 + $0x20] sm:$0xff]  ;;  %v3400_v9 = vld [vmem:[%s3334_s17 + $0x28] sm:$0xff]  ;;  %v380_v10 = vpack.c.bf16 %v3394_v7, %v3391_v6  ;;  %v3410_v12 = vld [vmem:[%s3334_s17 + $0x30] sm:$0xff]  ;;  %p2310_p6 = scmp.ne.s32.totalorder %s3150_s24, 1 }
  0x52   : > { %2682 = vmatprep.subr.bf16.mxu0 %v2973_v2  ;;  %v381_v11 = vpack.c.bf16 %v3400_v9, %v3397_v8  ;;  %4409 = vst [vmem:[#allocation6_spill] sm:$0xff] %v3410_v12  ;;  %v3413_v13 = vld [vmem:[%s3334_s17 + $0x38] sm:$0xff]  ;;  %v3416_v14 = vld [vmem:[%s3334_s17 + $0x40] sm:$0xff]  ;;  %v3419_v15 = vld [vmem:[%s3334_s17 + $0x48] sm:$0xff] }
  0x53   : > { %2684 = vmatprep.mubr.msk.bf16.mxu0 %vm403_vm1, %v379_v5  ;;  %4410 = vst [vmem:[#allocation7_spill] sm:$0xff] %v3413_v13  ;;  %4411 = vst [vmem:[#allocation8_spill] sm:$0xff] %v3416_v14  ;;  %v382_v16 = vpack.c.bf16 %v3413_v13, %v3410_v12  ;;  %v383_v17 = vpack.c.bf16 %v3419_v15, %v3416_v14  ;;  %v3428_v18 = vld [vmem:[%s3334_s17 + $0x50] sm:$0xff]  ;;  %v3431_v19 = vld [vmem:[%s3334_s17 + $0x58] sm:$0xff] }
  0x54   : > { %4412 = vst [vmem:[#allocation9_spill] sm:$0xff] %v3419_v15  ;;  %4413 = vst [vmem:[#allocation10_spill] sm:$0xff] %v3428_v18  ;;  %v3434_v20 = vld [vmem:[%s3334_s17 + $0x60] sm:$0xff]  ;;  %v3437_v21 = vld [vmem:[%s3334_s17 + $0x68] sm:$0xff]  ;;  %v384_v22 = vpack.c.bf16 %v3431_v19, %v3428_v18 }
  0x55   : > { %2683 = vmatpush3.bf16.msra.mxu0 %v2973_v2  ;;  %4414 = vst [vmem:[#allocation11_spill] sm:$0xff] %v3431_v19  ;;  %4415 = vst [vmem:[#allocation12_spill] sm:$0xff] %v3434_v20  ;;  %v385_v23 = vpack.c.bf16 %v3437_v21, %v3434_v20  ;;  %v3446_v24 = vld [vmem:[%s3334_s17 + $0x70] sm:$0xff]  ;;  %v3449_v25 = vld [vmem:[%s3334_s17 + $0x78] sm:$0xff] }
  0x56   : > { %4416 = vst [vmem:[#allocation13_spill] sm:$0xff] %v3437_v21  ;;  %4417 = vst [vmem:[#allocation14_spill] sm:$0xff] %v3446_v24  ;;  %v386_v26 = vpack.c.bf16 %v3449_v25, %v3446_v24 }
  0x57   : > { %4418 = vst [vmem:[#allocation15_spill] sm:$0xff] %v3449_v25 }
  0x58   : > { %2685 = vmatmul.mubr.msk.bf16.vlgmr.msra.gmra.mrb[0].mxu0 %vm403_vm1, %v380_v10 }
  0x59   : > { %2688 = vmatprep.mubr.msk.bf16.mxu0 %vm403_vm1, %v381_v11 }
  0x60   : > { %2689 = vmatmul.mubr.msk.bf16.gmra.mrb[4].mxu0 %vm403_vm1, %v382_v16 }
  0x61   : > { %2692 = vmatprep.mubr.msk.bf16.mxu0 %vm403_vm1, %v383_v17 }
  0x68   : > { %2693 = vmatmul.mubr.msk.bf16.gmra.mrb[8].mxu0 %vm403_vm1, %v384_v22 }
  0x69   : > { %2696 = vmatprep.mubr.msk.bf16.mxu0 %vm403_vm1, %v385_v23 }
  0x70   : > { %2697 = vmatmul.mubr.msk.bf16.gmra.mrb[12].mxu0 %vm403_vm1, %v386_v26 }
 0x12b   : > { %v2686_v27 = vpop.f32.mrb[0].mxu0 }
 0x12c   : > { %v462_v28 = vpop.f32.mrb[1].mxu0 }
 0x12d   : > { %v2687_v29 = vpop.f32.mrb[2].mxu0 }
 0x12e   : > { %v465_v30 = vpop.f32.mrb[3].mxu0  ;;  %v3454_v31 = vpack.c.bf16 %v2687_v29, %v2686_v27  ;;  %v2857_v32 = vpack.i.bf16 %v2687_v29, %v2686_v27 }
 0x12f   : > { %v525_v33 = vpack.c.bf16 %v465_v30, %v462_v28  ;;  %v2852_v34 = vpack.i.bf16 %v465_v30, %v462_v28 }
 0x131   : > { %541 = vrot.lane.b32.xlu0 %v525_v33, %s3172_s3  ;;  %2716 = vmatprep.mubr.msk.bf16.mxu1 %vm557_vm2, %v525_v33 }
 0x133   : > { %v2690_v35 = vpop.f32.mrb[4].mxu0 }
 0x134   : > { %v478_v36 = vpop.f32.mrb[5].mxu0 }
 0x135   : > { %543 = vrot.lane.b32.xlu0 %v3454_v31, %s3172_s3  ;;  %v2691_v37 = vpop.f32.mrb[6].mxu0 }
 0x136   : > { %v481_v38 = vpop.f32.mrb[7].mxu0  ;;  %v3460_v39 = vpack.c.bf16 %v2691_v37, %v2690_v35  ;;  %v2867_v40 = vpack.i.bf16 %v2691_v37, %v2690_v35 }
 0x137   : > { %v3462_v41 = vpack.c.bf16 %v481_v38, %v478_v36  ;;  %v2862_v42 = vpack.i.bf16 %v481_v38, %v478_v36 }
 0x139   : > { %545 = vrot.lane.b32.xlu1 %v3462_v41, %s3172_s3 }
 0x13b   : > { %v2694_v43 = vpop.f32.mrb[8].mxu0 }
 0x13c   : > { %v494_v44 = vpop.f32.mrb[9].mxu0 }
 0x13d   : > { %547 = vrot.lane.b32.xlu1 %v3460_v39, %s3172_s3  ;;  %v2695_v45 = vpop.f32.mrb[10].mxu0 }
 0x13e   : > { %v497_v46 = vpop.f32.mrb[11].mxu0  ;;  %v3468_v47 = vpack.c.bf16 %v2695_v45, %v2694_v43  ;;  %v2877_v48 = vpack.i.bf16 %v2695_v45, %v2694_v43 }
 0x13f   : > { %v3470_v49 = vpack.c.bf16 %v497_v46, %v494_v44  ;;  %v2872_v50 = vpack.i.bf16 %v497_v46, %v494_v44 }
 0x141   : > { %551 = vrot.lane.b32.xlu1 %v3468_v47, %s3172_s3  ;;  %549 = vrot.lane.b32.xlu0 %v3470_v49, %s3172_s3 }
 0x143   : > { %v2698_v51 = vpop.f32.mrb[12].mxu0 }
 0x144   : > { %v510_v52 = vpop.f32.mrb[13].mxu0 }
 0x145   : > { %v2699_v53 = vpop.f32.mrb[14].mxu0 }
 0x146   : > { %v513_v54 = vpop.f32.mrb[15].mxu0  ;;  %v3476_v55 = vpack.c.bf16 %v2699_v53, %v2698_v51  ;;  %v2887_v56 = vpack.i.bf16 %v2699_v53, %v2698_v51 }
 0x147   : > { %v3478_v57 = vpack.c.bf16 %v513_v54, %v510_v52  ;;  %v2882_v58 = vpack.i.bf16 %v513_v54, %v510_v52 }
 0x148   : > { %555 = vrot.lane.b32.xlu1 %v3476_v55, %s3172_s3 }
 0x149   : > { %553 = vrot.lane.b32.xlu0 %v3478_v57, %s3172_s3 }
 0x14c   : > { %2853 = vrot.lane.b32.xlu1 %v2852_v34, %s3172_s3 }
 0x14d   : > { %2858 = vrot.lane.b32.xlu0 %v2857_v32, %s3172_s3 }
 0x150   : > { %2863 = vrot.lane.b32.xlu1 %v2862_v42, %s3172_s3 }
 0x151   : > { %2868 = vrot.lane.b32.xlu0 %v2867_v40, %s3172_s3 }
 0x154   : > { %2873 = vrot.lane.b32.xlu1 %v2872_v50, %s3172_s3 }
 0x155   : > { %2878 = vrot.lane.b32.xlu0 %v2877_v48, %s3172_s3 }
 0x158   : > { %2883 = vrot.lane.b32.xlu1 %v2882_v58, %s3172_s3 }
 0x159   : > { %2888 = vrot.lane.b32.xlu0 %v2887_v56, %s3172_s3 }
 0x15c   : > { %2893 = vrot.lane.b32.xlu1 %v2852_v34, %s3173_s7 }
 0x15d   : > { %2898 = vrot.lane.b32.xlu0 %v2852_v34, %s3174_s18 }
 0x160   : > { %2903 = vrot.lane.b32.xlu1 %v2857_v32, %s3173_s7 }
 0x161   : > { %2913 = vrot.lane.b32.xlu0 %v2862_v42, %s3173_s7 }
 0x164   : > { %2908 = vrot.lane.b32.xlu1 %v2857_v32, %s3174_s18 }
 0x165   : > { %2923 = vrot.lane.b32.xlu0 %v2867_v40, %s3173_s7 }
 0x168   : > { %2918 = vrot.lane.b32.xlu1 %v2862_v42, %s3174_s18 }
 0x169   : > { %2933 = vrot.lane.b32.xlu0 %v2872_v50, %s3173_s7 }
 0x16c   : > { %2928 = vrot.lane.b32.xlu1 %v2867_v40, %s3174_s18 }
 0x16d   : > { %1330 = vrot.lane.b32.xlu0 %v525_v33, %s3174_s18 }
 0x170   : > { %2938 = vrot.lane.b32.xlu1 %v2872_v50, %s3174_s18 }
 0x171   : > { %1332 = vrot.lane.b32.xlu0 %v3454_v31, %s3174_s18 }
 0x174   : > { %2943 = vrot.lane.b32.xlu1 %v2877_v48, %s3173_s7 }
 0x175   : > { %1334 = vrot.lane.b32.xlu0 %v3462_v41, %s3174_s18 }
 0x178   : > { %2948 = vrot.lane.b32.xlu1 %v2877_v48, %s3174_s18 }
 0x17c   : > { %2953 = vrot.lane.b32.xlu1 %v2882_v58, %s3173_s7 }
 0x180   : > { %2958 = vrot.lane.b32.xlu1 %v2882_v58, %s3174_s18 }
 0x184   : > { %2963 = vrot.lane.b32.xlu1 %v2887_v56, %s3173_s7 }
 0x188   : > { %2968 = vrot.lane.b32.xlu1 %v2887_v56, %s3174_s18 }
 0x18c   : > { %1336 = vrot.lane.b32.xlu1 %v3460_v39, %s3174_s18 }
 0x190   : > { %1338 = vrot.lane.b32.xlu1 %v3470_v49, %s3174_s18 }
 0x194   : > { %1340 = vrot.lane.b32.xlu1 %v3468_v47, %s3174_s18 }
 0x198   : > { %1344 = vrot.lane.b32.xlu1 %v3476_v55, %s3174_s18 }
 0x19c   : > { %1342 = vrot.lane.b32.xlu1 %v3478_v57, %s3174_s18 }
 0x1a3   : > { %v542_v59 = vpop.permute.xlu0 %541 }
 0x1a4   : > { %2766 = vmatprep.subr.msk.bf16.mxu1 %vm557_vm2, %v542_v59  ;;  %v583_v60 = vsel %vm557_vm2, %v542_v59, 0 }
 0x1a5   : > { %2701 = vmatpush3.bf16.xpose.msra.mxu1 %v583_v60 }
 0x1a7   : > { %v544_v61 = vpop.permute.xlu0 %543 }
 0x1a8   : > { %2767 = vmatprep.subr.msk.bf16.mxu1 %vm557_vm2, %v544_v61  ;;  %v586_v63 = vsel %vm557_vm2, %v544_v61, 0 }
 0x1ab   : > { %v546_v62 = vpop.permute.xlu1 %545 }
 0x1ac   : > { %v589_v1 = vsel %vm557_vm2, %v546_v62, 0 }
 0x1ad   : > { %2703 = vmatpush3.bf16.xpose.msra.mxu1 %v586_v63 }
 0x1ae   : > { %2768 = vmatprep.subr.msk.bf16.mxu1 %vm557_vm2, %v546_v62 }
 0x1af   : > { %v548_v0 = vpop.permute.xlu1 %547 }
 0x1b0   : > { %v592_v16 = vsel %vm557_vm2, %v548_v0, 0 }
 0x1b3   : > { %v552_v2 = vpop.permute.xlu1 %551  ;;  %v550_v5 = vpop.permute.xlu0 %549 }
 0x1b4   : > { %v595_v33 = vsel %vm557_vm2, %v550_v5, 0  ;;  %v598_v40 = vsel %vm557_vm2, %v552_v2, 0 }
 0x1b5   : > { %2705 = vmatpush3.bf16.xpose.msra.mxu1 %v589_v1 }
 0x1b6   : > { %2769 = vmatprep.subr.msk.bf16.mxu1 %vm557_vm2, %v548_v0 }
 0x1ba   : > { %v556_v10 = vpop.permute.xlu1 %555 }
 0x1bb   : > { %v554_v11 = vpop.permute.xlu0 %553 }
 0x1bc   : > { %v601_v56 = vsel %vm557_vm2, %v554_v11, 0 }
 0x1bd   : > { %2707 = vmatpush3.bf16.xpose.msra.mxu1 %v592_v16 }
 0x1be   : > { %v2854_v17 = vpop.permute.xlu1 %2853  ;;  %2770 = vmatprep.subr.msk.bf16.mxu1 %vm557_vm2, %v550_v5 }
 0x1bf   : > { %v2859_v22 = vpop.permute.xlu0 %2858  ;;  %v2856_v27 = vunpack.i.h.bf16 %v2854_v17  ;;  %v2855_v28 = vunpack.i.l.bf16 %v2854_v17 }
 0x1c0   : > { %v2861_v23 = vunpack.i.h.bf16 %v2859_v22  ;;  %v2860_v26 = vunpack.i.l.bf16 %v2859_v22 }
 0x1c1   : > { %v1282_v34 = vpack.c.bf16 %v2856_v27, %v2855_v28 }
 0x1c2   : > { %v1283_v29 = vpack.c.bf16 %v2861_v23, %v2860_v26  ;;  %v2864_v30 = vpop.permute.xlu1 %2863  ;;  %v604_v26 = vsel %vm557_vm2, %v556_v10, 0 }
 0x1c3   : > { %v2869_v32 = vpop.permute.xlu0 %2868  ;;  %v2866_v17 = vunpack.i.h.bf16 %v2864_v30 }
 0x1c4   : > { %1348 = vrot.lane.b32.xlu0 %v1283_v29, %s3174_s18  ;;  %v2871_v46 = vunpack.i.h.bf16 %v2869_v32  ;;  %v2870_v48 = vunpack.i.l.bf16 %v2869_v32 }
 0x1c5   : > { %2709 = vmatpush3.bf16.xpose.msra.mxu1 %v595_v33 }
 0x1c6   : > { %2771 = vmatprep.subr.msk.bf16.mxu1 %vm557_vm2, %v552_v2  ;;  %v3527_v35 = vpop.permute.xlu1 %2873  ;;  %v1285_v59 = vpack.c.bf16 %v2871_v46, %v2870_v48 }
 0x1c7   : > { %v3529_v36 = vpop.permute.xlu0 %2878 }
 0x1c8   : > { %1346 = vrot.lane.b32.xlu0 %v1282_v34, %s3174_s18 }
 0x1ca   : > { %v3532_v37 = vpop.permute.xlu1 %2883 }
 0x1cb   : > { %v3534_v38 = vpop.permute.xlu0 %2888 }
 0x1cd   : > { %2711 = vmatpush3.bf16.xpose.msra.mxu1 %v598_v40 }
 0x1ce   : > { %v2894_v42 = vpop.permute.xlu1 %2893  ;;  %2772 = vmatprep.subr.msk.bf16.mxu1 %vm557_vm2, %v554_v11  ;;  %v2865_v11 = vunpack.i.l.bf16 %v2864_v30 }
 0x1cf   : > { %v2899_v43 = vpop.permute.xlu0 %2898  ;;  %v2896_v2 = vunpack.i.h.bf16 %v2894_v42  ;;  %v2895_v5 = vunpack.i.l.bf16 %v2894_v42 }
 0x1d0   : > { %v2901_v44 = vunpack.i.h.bf16 %v2899_v43  ;;  %v2900_v45 = vunpack.i.l.bf16 %v2899_v43  ;;  %v1284_v28 = vpack.c.bf16 %v2866_v17, %v2865_v11 }
 0x1d1   : > { %v1298_v27 = vpack.c.bf16 %v2896_v2, %v2895_v5 }
 0x1d2   : > { %v1290_v50 = vpack.c.bf16 %v2901_v44, %v2900_v45  ;;  %v2904_v51 = vpop.permute.xlu1 %2903  ;;  %v2881_v44 = vunpack.i.h.bf16 %v3529_v36  ;;  %v2880_v45 = vunpack.i.l.bf16 %v3529_v36 }
 0x1d3   : > { %v2906_v52 = vunpack.i.h.bf16 %v2904_v51  ;;  %v2905_v53 = vunpack.i.l.bf16 %v2904_v51  ;;  %v2914_v54 = vpop.permute.xlu0 %2913 }
 0x1d4   : > { %1362 = vrot.lane.b32.xlu0 %v1290_v50, %s3174_s18  ;;  %v2916_v29 = vunpack.i.h.bf16 %v2914_v54  ;;  %v2915_v32 = vunpack.i.l.bf16 %v2914_v54  ;;  %v1287_v36 = vpack.c.bf16 %v2881_v44, %v2880_v45 }
 0x1d5   : > { %v1299_v58 = vpack.c.bf16 %v2906_v52, %v2905_v53  ;;  %2713 = vmatpush3.bf16.xpose.msra.mxu1 %v601_v56  ;;  %v2876_v52 = vunpack.i.h.bf16 %v3527_v35  ;;  %v2875_v53 = vunpack.i.l.bf16 %v3527_v35  ;;  %v2890_v35 = vunpack.i.l.bf16 %v3534_v38 }
 0x1d6   : > { %v2909_v60 = vpop.permute.xlu1 %2908  ;;  %2773 = vmatprep.subr.msk.bf16.mxu1 %vm557_vm2, %v556_v10  ;;  %v1300_v10 = vpack.c.bf16 %v2916_v29, %v2915_v32 }
 0x1d7   : > { %v2911_v61 = vunpack.i.h.bf16 %v2909_v60  ;;  %v2910_v62 = vunpack.i.l.bf16 %v2909_v60  ;;  %1380 = vrot.lane.b32.xlu1 %v1299_v58, %s3174_s18  ;;  %v2924_v63 = vpop.permute.xlu0 %2923 }
 0x1d8   : > { %v2926_v0 = vunpack.i.h.bf16 %v2924_v63  ;;  %v2925_v1 = vunpack.i.l.bf16 %v2924_v63  ;;  %1352 = vrot.lane.b32.xlu0 %v1285_v59, %s3174_s18 }
 0x1d9   : > { %v1291_v16 = vpack.c.bf16 %v2911_v61, %v2910_v62  ;;  %v2886_v61 = vunpack.i.h.bf16 %v3532_v37  ;;  %v2885_v62 = vunpack.i.l.bf16 %v3532_v37 }
 0x1da   : > { %v1301_v22 = vpack.c.bf16 %v2926_v0, %v2925_v1  ;;  %v2919_v23 = vpop.permute.xlu1 %2918 }
 0x1db   : > { %1364 = vrot.lane.b32.xlu1 %v1291_v16, %s3174_s18  ;;  %v2921_v30 = vunpack.i.h.bf16 %v2919_v23  ;;  %v2920_v42 = vunpack.i.l.bf16 %v2919_v23  ;;  %v2934_v54 = vpop.permute.xlu0 %2933 }
 0x1dc   : > { %1384 = vrot.lane.b32.xlu0 %v1301_v22, %s3174_s18  ;;  %v2936_v58 = vunpack.i.h.bf16 %v2934_v54  ;;  %v2935_v59 = vunpack.i.l.bf16 %v2934_v54 }
 0x1dd   : > { %2715 = vmatpush3.bf16.xpose.msra.mxu1 %v604_v26  ;;  %v1292_v48 = vpack.c.bf16 %v2921_v30, %v2920_v42 }
 0x1de   : > { %v2929_v33 = vpop.permute.xlu1 %2928  ;;  %v1302_v60 = vpack.c.bf16 %v2936_v58, %v2935_v59 }
 0x1df   : > { %v2931_v34 = vunpack.i.h.bf16 %v2929_v33  ;;  %v2930_v40 = vunpack.i.l.bf16 %v2929_v33  ;;  %1378 = vrot.lane.b32.xlu1 %v1298_v27, %s3174_s18  ;;  %v1331_v1 = vpop.permute.xlu0 %1330 }
 0x1e0   : > { %1350 = vrot.lane.b32.xlu0 %v1284_v28, %s3174_s18 }
 0x1e1   : > { %v1293_v43 = vpack.c.bf16 %v2931_v34, %v2930_v40 }
 0x1e2   : > { %v2939_v46 = vpop.permute.xlu1 %2938 }
 0x1e3   : > { %1368 = vrot.lane.b32.xlu1 %v1293_v43, %s3174_s18  ;;  %v2941_v50 = vunpack.i.h.bf16 %v2939_v46  ;;  %v2940_v51 = vunpack.i.l.bf16 %v2939_v46 }
 0x1e4   : > { %2717 = vmatmul.mubr.msk.bf16.vlgmr.msra.gmra.mrb[0].mxu1 %vm557_vm2, %v3454_v31  ;;  %1382 = vrot.lane.b32.xlu0 %v1300_v10, %s3174_s18  ;;  %v1286_v31 = vpack.c.bf16 %v2876_v52, %v2875_v53  ;;  %v2320_v53 = vld [vmem:[%s3321_s12] sm:$0xff]  }
 0x1e5   : > { %2720 = vmatprep.mubr.msk.bf16.mxu1 %vm557_vm2, %v3462_v41  ;;  %v1294_v56 = vpack.c.bf16 %v2941_v50, %v2940_v51  ;;  %v2891_v41 = vunpack.i.h.bf16 %v3534_v38  ;;  %v2479_v51 = vld [vmem:[%s3321_s12 + $0x8] sm:$0xff]   ;;  %v2322_v54 = vunpack.c.h.bf16 %v2320_v53  ;;  %v2321_v58 = vunpack.c.l.bf16 %v2320_v53 }
 0x1e6   : > { %v2325_v52 = vunpack.c.l.bf16 %v2479_v51 }
 0x1e7   : > { %1366 = vrot.lane.b32.xlu1 %v1292_v48, %s3174_s18  ;;  %v1289_v63 = vpack.c.bf16 %v2891_v41, %v2890_v35  ;;  %v2481_v41 = vld [vmem:[%s3321_s12 + $0x18] sm:$0xff]  }
 0x1e8   : > { %1356 = vrot.lane.b32.xlu0 %v1287_v36, %s3174_s18 }
 0x1eb   : > { %1370 = vrot.lane.b32.xlu1 %v1294_v56, %s3174_s18 }
 0x1ec   : > { %2721 = vmatmul.mubr.msk.bf16.gmra.mrb[4].mxu1 %vm557_vm2, %v3460_v39  ;;  %1354 = vrot.lane.b32.xlu0 %v1286_v31, %s3174_s18  ;;  %v1288_v39 = vpack.c.bf16 %v2886_v61, %v2885_v62  ;;  %v2326_v62 = vunpack.c.h.bf16 %v2479_v51 }
 0x1ed   : > { %2724 = vmatprep.mubr.msk.bf16.mxu1 %vm557_vm2, %v3470_v49  ;;  %v3579_v49 = vpop.permute.xlu1 %2943 }
 0x1f0   : > { %1386 = vrot.lane.b32.xlu0 %v1302_v60, %s3174_s18 }
 0x1f1   : > { %v3581_v38 = vpop.permute.xlu1 %2948 }
 0x1f4   : > { %2725 = vmatmul.mubr.msk.bf16.gmra.mrb[8].mxu1 %vm557_vm2, %v3468_v47  ;;  %1360 = vrot.lane.b32.xlu0 %v1289_v63, %s3174_s18  ;;  %v2333_v63 = vunpack.c.l.bf16 %v2481_v41 }
 0x1f5   : > { %2728 = vmatprep.mubr.msk.bf16.mxu1 %vm557_vm2, %v3478_v57  ;;  %v3583_v37 = vpop.permute.xlu1 %2953  ;;  %v1333_v57 = vpop.permute.xlu0 %1332 }
 0x1f8   : > { %1358 = vrot.lane.b32.xlu0 %v1288_v39, %s3174_s18  ;;  %v2480_v39 = vld [vmem:[%s3321_s12 + $0x10] sm:$0xff]  }
 0x1f9   : > { %v3585_v0 = vpop.permute.xlu1 %2958  ;;  %v1335_v16 = vpop.permute.xlu0 %1334 }
 0x1fc   : > { %2729 = vmatmul.mubr.msk.bf16.gmra.mrb[12].mxu1 %vm557_vm2, %v3476_v55 }
 0x1fd   : > { %v3587_v47 = vpop.permute.xlu1 %2963 }
 0x201   : > { %v3589_v2 = vpop.permute.xlu1 %2968 }
 0x205   : > { %v1337_v5 = vpop.permute.xlu1 %1336 }
 0x209   : > { %v1339_v17 = vpop.permute.xlu1 %1338 }
 0x20d   : > { %v1341_v22 = vpop.permute.xlu1 %1340 }
 0x211   : > { %v1345_v23 = vpop.permute.xlu1 %1344 }
 0x215   : > { %v1343_v26 = vpop.permute.xlu1 %1342 }
 0x236   : > { %v1349_v11 = vpop.permute.xlu0 %1348 }
 0x23a   : > { %v1347_v55 = vpop.permute.xlu0 %1346 }
 0x23b   : > { %2543 = vmatprep.subr.bf16.mxu0 %v1347_v55  ;;  %v2483_v55 = vld [vmem:[%s3321_s12 + $0x28] sm:$0xff]  }
 0x23c   : > { %2544 = vmatpush3.bf16.msra.mxu0 %v1331_v1 }
 0x23d   : > { %2545 = vmatprep.subr.bf16.mxu0 %v1349_v11  ;;  %v2334_v11 = vunpack.c.h.bf16 %v2481_v41 }
 0x240   : > { %2546 = vmatpush3.bf16.msra.mxu0 %v1333_v57 }
 0x246   : > { %v3591_v27 = vpop.permute.xlu0 %1362 }
 0x249   : > { %v3593_v28 = vpop.permute.xlu1 %1380 }
 0x24a   : > { %v1353_v29 = vpop.permute.xlu0 %1352 }
 0x24d   : > { %v3595_v32 = vpop.permute.xlu1 %1364 }
 0x24e   : > { %v3597_v33 = vpop.permute.xlu0 %1384 }
 0x251   : > { %v1379_v34 = vpop.permute.xlu1 %1378 }
 0x252   : > { %2750 = vmatprep.subr.bf16.mxu1 %v1379_v34  ;;  %v1351_v40 = vpop.permute.xlu0 %1350 }
 0x253   : > { %2547 = vmatprep.subr.bf16.mxu0 %v1351_v40  ;;  %2758 = vmatpush3.bf16.msra.mxu1 %v3591_v27  ;;  %v2341_v40 = vunpack.c.l.bf16 %v2483_v55 }
 0x254   : > { %2548 = vmatpush3.bf16.msra.mxu0 %v1335_v16  ;;  %2751 = vmatprep.subr.bf16.mxu1 %v3593_v28 }
 0x255   : > { %v3601_v30 = vpop.permute.xlu1 %1368  ;;  %2549 = vmatprep.subr.bf16.mxu0 %v1353_v29 }
 0x256   : > { %v3603_v42 = vpop.permute.xlu0 %1382 }
 0x257   : > { %2759 = vmatpush3.bf16.msra.mxu1 %v3595_v32 }
 0x258   : > { %2550 = vmatpush3.bf16.msra.mxu0 %v1337_v5  ;;  %2752 = vmatprep.subr.bf16.mxu1 %v3603_v42 }
 0x259   : > { %v3607_v43 = vpop.permute.xlu1 %1366 }
 0x25a   : > { %v1357_v44 = vpop.permute.xlu0 %1356 }
 0x25b   : > { %2760 = vmatpush3.bf16.msra.mxu1 %v3607_v43 }
 0x25c   : > { %2753 = vmatprep.subr.bf16.mxu1 %v3597_v33 }
 0x25d   : > { %v3614_v46 = vpop.permute.xlu1 %1370 }
 0x25e   : > { %v1355_v45 = vpop.permute.xlu0 %1354 }
 0x25f   : > { %2551 = vmatprep.subr.bf16.mxu0 %v1355_v45  ;;  %2761 = vmatpush3.bf16.msra.mxu1 %v3601_v30 }
 0x260   : > { %2552 = vmatpush3.bf16.msra.mxu0 %v1339_v17  ;;  %v2329_v17 = vunpack.c.l.bf16 %v2480_v39 }
 0x261   : > { %2553 = vmatprep.subr.bf16.mxu0 %v1357_v44  ;;  %v2482_v44 = vld [vmem:[%s3321_s12 + $0x20] sm:$0xff]  }
 0x262   : > { %v3612_v10 = vpop.permute.xlu0 %1386 }
 0x263   : > { %2754 = vmatprep.subr.bf16.mxu1 %v3612_v10 }
 0x264   : > { %2554 = vmatpush3.bf16.msra.mxu0 %v1341_v22  ;;  %2762 = vmatpush3.bf16.msra.mxu1 %v3614_v46 }
 0x266   : > { %v1361_v48 = vpop.permute.xlu0 %1360 }
 0x26a   : > { %v1359_v50 = vpop.permute.xlu0 %1358 }
 0x26b   : > { %2555 = vmatprep.subr.bf16.mxu0 %v1359_v50 }
 0x26c   : > { %2556 = vmatpush3.bf16.msra.mxu0 %v1343_v26 }
 0x26d   : > { %2557 = vmatprep.subr.bf16.mxu0 %v1361_v48 }
 0x270   : > { %2558 = vmatpush3.bf16.msra.mxu0 %v1345_v23 }
 0x271   : > { %2607 = vmatprep.subr.bf16.mxu0 %v1379_v34  ;;  %v2330_v34 = vunpack.c.h.bf16 %v2480_v39  ;;  %v2945_v39 = vunpack.i.l.bf16 %v3579_v49 }
 0x2b7   : > { %v2718_v36 = vpop.f32.mrb[0].mxu1 }
 0x2b8   : > { %v3620_v56 = vsub.f32 %v2718_v36, %v2325_v52  ;;  %v640_v31 = vpop.f32.mrb[1].mxu1  ;;  %v2337_v52 = vunpack.c.l.bf16 %v2482_v44 }
 0x2b9   : > { %v2719_v59 = vpop.f32.mrb[2].mxu1  ;;  %v3626_v61 = vsub.f32 %v640_v31, %v2321_v58 }
 0x2ba   : > { %v643_v35 = vpop.f32.mrb[3].mxu1  ;;  %755 = vmax.xlane.f32.xlu0 %v3620_v56  ;;  %v3631_v57 = vsub.f32 %v2719_v59, %v2326_v62  ;;  %v2950_v62 = vunpack.i.l.bf16 %v3581_v38 }
 0x2bb   : > { %v3624_v60 = vsub.f32 %v643_v35, %v2322_v54  ;;  %v2951_v35 = vunpack.i.h.bf16 %v3581_v38 }
 0x2bd   : > { %753 = vmax.xlane.f32.xlu1 %v3624_v60 }
 0x2be   : > { %751 = vmax.xlane.f32.xlu0 %v3626_v61 }
 0x2bf   : > { %v2722_v1 = vpop.f32.mrb[4].mxu1 }
 0x2c0   : > { %v3633_v5 = vsub.f32 %v2722_v1, %v2333_v63  ;;  %v656_v16 = vpop.f32.mrb[5].mxu1  ;;  %v2946_v63 = vunpack.i.h.bf16 %v3579_v49  ;;  %v1295_v1 = vpack.c.bf16 %v2951_v35, %v2950_v62 }
 0x2c1   : > { %v2723_v22 = vpop.f32.mrb[6].mxu1  ;;  %v3638_v26 = vsub.f32 %v656_v16, %v2329_v17  ;;  %v2342_v17 = vunpack.c.h.bf16 %v2483_v55 }
 0x2c2   : > { %763 = vmax.xlane.f32.xlu1 %v3633_v5  ;;  %v659_v23 = vpop.f32.mrb[7].mxu1  ;;  %757 = vmax.xlane.f32.xlu0 %v3631_v57  ;;  %v3640_v29 = vsub.f32 %v2723_v22, %v2334_v11  ;;  %v1303_v16 = vpack.c.bf16 %v2946_v63, %v2945_v39  ;;  %v2485_v11 = vld [vmem:[%s3321_s12 + $0x38] sm:$0xff]  }
 0x2c3   : > { %v3645_v48 = vsub.f32 %v659_v23, %v2330_v34  ;;  %v2338_v23 = vunpack.c.h.bf16 %v2482_v44  ;;  %v2349_v34 = vunpack.c.l.bf16 %v2485_v11 }
 0x2c6   : > { %759 = vmax.xlane.f32.xlu1 %v3638_v26  ;;  %765 = vmax.xlane.f32.xlu0 %v3640_v29 }
 0x2c7   : > { %v2726_v45 = vpop.f32.mrb[8].mxu1 }
 0x2c8   : > { %v3647_v50 = vsub.f32 %v2726_v45, %v2341_v40  ;;  %v672_v51 = vpop.f32.mrb[9].mxu1  ;;  %v2484_v40 = vld [vmem:[%s3321_s12 + $0x30] sm:$0xff]  }
 0x2c9   : > { %v2727_v53 = vpop.f32.mrb[10].mxu1  ;;  %v3651_v54 = vsub.f32 %v672_v51, %v2337_v52  ;;  %v2345_v49 = vunpack.c.l.bf16 %v2484_v40  ;;  %v2350_v51 = vunpack.c.h.bf16 %v2485_v11 }
 0x2ca   : > { %771 = vmax.xlane.f32.xlu1 %v3647_v50  ;;  %v675_v36 = vpop.f32.mrb[11].mxu1  ;;  %761 = vmax.xlane.f32.xlu0 %v3645_v48  ;;  %v3661_v22 = vsub.f32 %v2727_v53, %v2342_v17  ;;  %v2346_v53 = vunpack.c.h.bf16 %v2484_v40 }
 0x2cb   : > { %v3665_v38 = vsub.f32 %v675_v36, %v2338_v23 }
 0x2ce   : > { %767 = vmax.xlane.f32.xlu1 %v3651_v54 }
 0x2cf   : > { %v2730_v31 = vpop.f32.mrb[12].mxu1 }
 0x2d0   : > { %v688_v58 = vpop.f32.mrb[13].mxu1  ;;  %v3667_v45 = vsub.f32 %v2730_v31, %v2349_v34 }
 0x2d1   : > { %v2731_v59 = vpop.f32.mrb[14].mxu1  ;;  %v3671_v52 = vsub.f32 %v688_v58, %v2345_v49 }
 0x2d2   : > { %v691_v41 = vpop.f32.mrb[15].mxu1  ;;  %v3673_v55 = vsub.f32 %v2731_v59, %v2350_v51 }
 0x2d3   : > { %v3677_v44 = vsub.f32 %v691_v41, %v2346_v53 }
 0x2df   : > { %1372 = vrot.lane.b32.xlu1 %v1295_v1, %s3174_s18 }
 0x2e0   : > { %1388 = vrot.lane.b32.xlu0 %v1303_v16, %s3174_s18 }
 0x2ff   : > { %773 = vmax.xlane.f32.xlu0 %v3661_v22 }
 0x303   : > { %779 = vmax.xlane.f32.xlu1 %v3667_v45  ;;  %769 = vmax.xlane.f32.xlu0 %v3665_v38 }
 0x307   : > { %775 = vmax.xlane.f32.xlu1 %v3671_v52  ;;  %781 = vmax.xlane.f32.xlu0 %v3673_v55 }
 0x30b   : > { %777 = vmax.xlane.f32.xlu0 %v3677_v44 }
 0x347   : > { %v756_v36 = vpop.xlane.xlu0 %755 }
 0x348   : > { %v785_v31 = vsub.f32 %v3620_v56, %v756_v36 }
 0x34a   : > { %v803_v35 = vmul.f32 1.442695, %v785_v31  ;;  %v754_v62 = vpop.xlane.xlu1 %753 }
 0x34b   : > { %v752_v63 = vpop.xlane.xlu0 %751  ;;  %v784_v17 = vsub.f32 %v3624_v60, %v754_v62 }
 0x34c   : > { %2974 = vpow2.f32 %v803_v35  ;;  %v783_v58 = vsub.f32 %v3626_v61, %v752_v63 }
 0x34d   : > { %v801_v49 = vmul.f32 1.442695, %v784_v17 }
 0x34e   : > { %v799_v59 = vmul.f32 1.442695, %v783_v58 }
 0x34f   : > { %v764_v39 = vpop.xlane.xlu1 %763  ;;  %v758_v1 = vpop.xlane.xlu0 %757 }
 0x350   : > { %2976 = vpow2.f32 %v799_v59  ;;  %v789_v16 = vsub.f32 %v3633_v5, %v764_v39  ;;  %v786_v41 = vsub.f32 %v3631_v57, %v758_v1 }
 0x352   : > { %v811_v11 = vmul.f32 1.442695, %v789_v16  ;;  %v805_v23 = vmul.f32 1.442695, %v786_v41  ;;  %v2956_v16 = vunpack.i.h.bf16 %v3583_v37  ;;  %v2955_v41 = vunpack.i.l.bf16 %v3583_v37 }
 0x353   : > { %v760_v34 = vpop.xlane.xlu1 %759  ;;  %v766_v56 = vpop.xlane.xlu0 %765 }
 0x354   : > { %2978 = vpow2.f32 %v811_v11  ;;  %v787_v40 = vsub.f32 %v3638_v26, %v760_v34  ;;  %v790_v61 = vsub.f32 %v3640_v29, %v766_v56  ;;  %v1304_v17 = vpack.c.bf16 %v2956_v16, %v2955_v41 }
 0x355   : > { %2980 = vpow2.f32 %v805_v23  ;;  %v2961_v11 = vunpack.i.h.bf16 %v3585_v0  ;;  %v2960_v23 = vunpack.i.l.bf16 %v3585_v0 }
 0x356   : > { %v3687_v51 = vpop.eup %2974  ;;  %v807_v53 = vmul.f32 1.442695, %v787_v40  ;;  %v813_v60 = vmul.f32 1.442695, %v790_v61 }
 0x357   : > { %v772_v36 = vpop.xlane.xlu1 %771  ;;  %835 = vadd.xlane.f32.xlu0 %v3687_v51  ;;  %v762_v57 = vpop.xlane.xlu0 %761  ;;  %v1296_v34 = vpack.c.bf16 %v2961_v11, %v2960_v23 }
 0x358   : > { %2982 = vpow2.f32 %v807_v53  ;;  %v788_v5 = vsub.f32 %v3645_v48, %v762_v57  ;;  %v793_v56 = vsub.f32 %v3647_v50, %v772_v36 }
 0x359   : > { %2984 = vpow2.f32 %v801_v49 }
 0x35a   : > { %v3691_v31 = vpop.eup %2976  ;;  %2986 = vpow2.f32 %v813_v60  ;;  %v809_v29 = vmul.f32 1.442695, %v788_v5  ;;  %v819_v40 = vmul.f32 1.442695, %v793_v56 }
 0x35b   : > { %v768_v35 = vpop.xlane.xlu1 %767  ;;  %831 = vadd.xlane.f32.xlu0 %v3691_v31  ;;  %v3694_v26 = vpop.permute.xlu0 %1388 }
 0x35c   : > { %2755 = vmatprep.subr.bf16.mxu1 %v3694_v26  ;;  %2988 = vpow2.f32 %v809_v29  ;;  %v791_v49 = vsub.f32 %v3651_v54, %v768_v35 }
 0x35d   : > { %2990 = vpow2.f32 %v819_v40 }
 0x35e   : > { %v3697_v62 = vpop.eup %2978  ;;  %v815_v53 = vmul.f32 1.442695, %v791_v49 }
 0x35f   : > { %v3699_v63 = vpop.eup %2980  ;;  %v3701_v58 = vpop.permute.xlu1 %1372  ;;  %843 = vadd.xlane.f32.xlu0 %v3697_v62 }
 0x360   : > { %837 = vadd.xlane.f32.xlu1 %v3699_v63  ;;  %2763 = vmatpush3.bf16.msra.mxu1 %v3701_v58  ;;  %2992 = vpow2.f32 %v815_v53  ;;  %v2970_v53 = vunpack.i.l.bf16 %v3589_v2 }
 0x362   : > { %v3706_v48 = vpop.eup %2982 }
 0x363   : > { %v3708_v59 = vpop.eup %2984  ;;  %839 = vadd.xlane.f32.xlu0 %v3706_v48 }
 0x364   : > { %833 = vadd.xlane.f32.xlu1 %v3708_v59  ;;  %v3712_v39 = vpop.eup %2986 }
 0x366   : > { %v3715_v1 = vpop.eup %2988 }
 0x367   : > { %v3731_v35 = vpop.eup %2990 }
 0x368   : > { %845 = vadd.xlane.f32.xlu1 %v3712_v39 }
 0x36c   : > { %841 = vadd.xlane.f32.xlu1 %v3715_v1 }
 0x379   : > { %1390 = vrot.lane.b32.xlu0 %v1304_v17, %s3174_s18 }
 0x37d   : > { %1374 = vrot.lane.b32.xlu1 %v1296_v34, %s3174_s18 }
 0x38c   : > { %v774_v61 = vpop.xlane.xlu0 %773 }
 0x38d   : > { %v794_v37 = vsub.f32 %v3661_v22, %v774_v61  ;;  %v2971_v61 = vunpack.i.h.bf16 %v3589_v2 }
 0x38f   : > { %v821_v5 = vmul.f32 1.442695, %v794_v37  ;;  %v2966_v37 = vunpack.i.h.bf16 %v3587_v47 }
 0x390   : > { %v780_v57 = vpop.xlane.xlu1 %779  ;;  %v770_v60 = vpop.xlane.xlu0 %769 }
 0x391   : > { %v797_v0 = vsub.f32 %v3667_v45, %v780_v57  ;;  %v792_v29 = vsub.f32 %v3665_v38, %v770_v60  ;;  %2994 = vpow2.f32 %v821_v5  ;;  %v3735_v45 = vpop.eup %2992  ;;  %v2965_v57 = vunpack.i.l.bf16 %v3587_v47  ;;  %v2510_v47 = vld [vmem:[%s4390_s4 + $0xc8] sm:$0xff]  }
 0x392   : > { %v1297_v60 = vpack.c.bf16 %v2971_v61, %v2970_v53  ;;  %v2453_v53 = vunpack.c.l.bf16 %v2510_v47 }
 0x393   : > { %v817_v16 = vmul.f32 1.442695, %v792_v29  ;;  %v827_v50 = vmul.f32 1.442695, %v797_v0  ;;  %v1305_v5 = vpack.c.bf16 %v2966_v37, %v2965_v57  ;;  %v2454_v37 = vunpack.c.h.bf16 %v2510_v47 }
 0x394   : > { %v776_v41 = vpop.xlane.xlu1 %775  ;;  %v782_v17 = vpop.xlane.xlu0 %781 }
 0x395   : > { %v795_v54 = vsub.f32 %v3671_v52, %v776_v41  ;;  %v798_v36 = vsub.f32 %v3673_v55, %v782_v17  ;;  %2996 = vpow2.f32 %v817_v16 }
 0x396   : > { %2998 = vpow2.f32 %v827_v50 }
 0x397   : > { %v829_v22 = vmul.f32 1.442695, %v798_v36  ;;  %v823_v11 = vmul.f32 1.442695, %v795_v54 }
 0x398   : > { %851 = vadd.xlane.f32.xlu0 %v3731_v35  ;;  %v778_v23 = vpop.xlane.xlu0 %777 }
 0x399   : > { %v796_v38 = vsub.f32 %v3677_v44, %v778_v23  ;;  %3000 = vpow2.f32 %v829_v22  ;;  %v2493_v22 = vld [vmem:[%s4390_s4 + $0x40] sm:$0xff]  }
 0x39a   : > { %3002 = vpow2.f32 %v823_v11  ;;  %v2502_v11 = vld [vmem:[%s4390_s4 + $0x88] sm:$0xff]   ;;  %v2352_v23 = vld [vmem:[%s4390_s4] sm:$0xff]  }
 0x39b   : > { %v825_v34 = vmul.f32 1.442695, %v796_v38  ;;  %v3738_v52 = vpop.eup %2994  ;;  %v2509_v38 = vld [vmem:[%s4390_s4 + $0xc0] sm:$0xff]   ;;  %v2422_v57 = vunpack.c.h.bf16 %v2502_v11  ;;  %v2353_v25 = vunpack.c.l.bf16 %v2352_v23  ;;  %v2354_v47 = vunpack.c.h.bf16 %v2352_v23 }
 0x39c   : > { %847 = vadd.xlane.f32.xlu0 %v3735_v45  ;;  %v2449_v21 = vunpack.c.l.bf16 %v2509_v38 }
 0x39d   : > { %3004 = vpow2.f32 %v825_v34 }
 0x39f   : > { %v3740_v55 = vpop.eup %2996 }
 0x3a0   : > { %853 = vadd.xlane.f32.xlu0 %v3738_v52  ;;  %v3744_v56 = vpop.eup %2998 }
 0x3a1   : > { %849 = vadd.xlane.f32.xlu1 %v3740_v55 }
 0x3a3   : > { %v3746_v40 = vpop.eup %3000 }
 0x3a4   : > { %859 = vadd.xlane.f32.xlu0 %v3744_v56  ;;  %v3750_v44 = vpop.eup %3002 }
 0x3a5   : > { %861 = vadd.xlane.f32.xlu1 %v3746_v40 }
 0x3a7   : > { %v3752_v49 = vpop.eup %3004 }
 0x3a8   : > { %855 = vadd.xlane.f32.xlu0 %v3750_v44 }
 0x3a9   : > { %857 = vadd.xlane.f32.xlu1 %v3752_v49 }
 0x3ba   : > { %1376 = vrot.lane.b32.xlu1 %v1297_v60, %s3174_s18 }
 0x3be   : > { %1392 = vrot.lane.b32.xlu0 %v1305_v5, %s3174_s18  ;;  %v2385_v5 = vunpack.c.l.bf16 %v2493_v22 }
 0x3e4   : > { %v836_v0 = vpop.xlane.xlu0 %835 }
 0x3e5   : > { %3006 = vrcp.f32 %v836_v0  ;;  %v2494_v0 = vld [vmem:[%s4390_s4 + $0x48] sm:$0xff]  }
 0x3e6   : > { %v2390_v24 = vunpack.c.h.bf16 %v2494_v0 }
 0x3e8   : > { %v832_v29 = vpop.xlane.xlu0 %831 }
 0x3e9   : > { %3008 = vrcp.f32 %v832_v29  ;;  %v2421_v29 = vunpack.c.l.bf16 %v2502_v11  ;;  %v2450_v11 = vunpack.c.h.bf16 %v2509_v38 }
 0x3ec   : > { %v844_v16 = vpop.xlane.xlu0 %843 }
 0x3ed   : > { %v838_v41 = vpop.xlane.xlu1 %837 }
 0x3ee   : > { %3010 = vrcp.f32 %v838_v41 }
 0x3ef   : > { %v3007_v2 = vpop.eup %3006 }
 0x3f0   : > { %v840_v17 = vpop.xlane.xlu0 %839  ;;  %v3781_v61 = vmul.f32 %v3007_v2, %v3687_v51  ;;  %v2501_v51 = vld [vmem:[%s4390_s4 + $0x80] sm:$0xff]  }
 0x3f1   : > { %v834_v50 = vpop.xlane.xlu1 %833  ;;  %v2417_v15 = vunpack.c.l.bf16 %v2501_v51  ;;  %v2418_v14 = vunpack.c.h.bf16 %v2501_v51 }
 0x3f2   : > { %3012 = vrcp.f32 %v834_v50  ;;  %v1076_v20 = vmul.f32 %v2453_v53, %v3781_v61 }
 0x3f3   : > { %v3009_v34 = vpop.eup %3008  ;;  %3014 = vrcp.f32 %v840_v17  ;;  %v2386_v17 = vunpack.c.h.bf16 %v2493_v22  ;;  %v2389_v22 = vunpack.c.l.bf16 %v2494_v0 }
 0x3f4   : > { %v3762_v54 = vpop.permute.xlu0 %1390  ;;  %v879_v2 = vmul.f32 %v3009_v34, %v3691_v31 }
 0x3f5   : > { %v846_v36 = vpop.xlane.xlu1 %845  ;;  %2756 = vmatprep.subr.bf16.mxu1 %v3762_v54 }
 0x3f6   : > { %v976_v23 = vmul.f32 %v2385_v5, %v879_v2  ;;  %v927_v34 = vmul.f32 %v2353_v25, %v879_v2  ;;  %v3803_v53 = vmul.f32 %v2449_v21, %v879_v2  ;;  %v978_v25 = vmul.f32 %v2389_v22, %v3781_v61  ;;  %v2486_v21 = vld [vmem:[%s4390_s4 + $0x8] sm:$0xff]  }
 0x3f8   : > { %v3011_v60 = vpop.eup %3010 }
 0x3f9   : > { %v882_v41 = vmul.f32 %v3011_v60, %v3699_v63  ;;  %v842_v50 = vpop.xlane.xlu1 %841  ;;  %v3795_v60 = vmul.f32 %v2421_v29, %v3781_v61 }
 0x3fa   : > { %3016 = vrcp.f32 %v842_v50 }
 0x3fb   : > { %v1077_v19 = vmul.f32 %v2454_v37, %v882_v41  ;;  %v3792_v18 = vmul.f32 %v2422_v57, %v882_v41  ;;  %3018 = vrcp.f32 %v846_v36  ;;  %v979_v29 = vmul.f32 %v2390_v24, %v882_v41 }
 0x3fc   : > { %v3013_v63 = vpop.eup %3012  ;;  %3020 = vrcp.f32 %v844_v16  ;;  %v2358_v24 = vunpack.c.h.bf16 %v2486_v21 }
 0x3fd   : > { %v880_v13 = vmul.f32 %v3013_v63, %v3708_v59  ;;  %v3798_v12 = vpop.permute.xlu1 %1374  ;;  %v1097_v31 = vpack.c.bf16 %v1077_v19, %v1076_v20  ;;  %v1096_v38 = vpack.c.bf16 %v3792_v18, %v3795_v60  ;;  %v3807_v59 = vmul.f32 %v2417_v15, %v879_v2  ;;  %v3015_v0 = vpop.eup %3014  ;;  %v2495_v15 = vld [vmem:[%s4390_s4 + $0x50] sm:$0xff]  }
 0x3fe   : > { %2764 = vmatpush3.bf16.msra.mxu1 %v3798_v12  ;;  %v2394_v16 = vunpack.c.h.bf16 %v2495_v15  ;;  %v2357_v2 = vunpack.c.l.bf16 %v2486_v21  ;;  %v930_v63 = vmul.f32 %v2358_v24, %v882_v41 }
 0x3ff   : > { %1563 = vmatprep.mubr.bf16.mxu1 %v1097_v31  ;;  %v977_v37 = vmul.f32 %v2386_v17, %v880_v13  ;;  %v928_v57 = vmul.f32 %v2354_v47, %v880_v13  ;;  %v3805_v50 = vmul.f32 %v2450_v11, %v880_v13  ;;  %v3809_v19 = vmul.f32 %v2418_v14, %v880_v13 }
 0x400   : > { %v1095_v14 = vpack.c.bf16 %v979_v29, %v978_v25  ;;  %v3823_v17 = vmul.f32 %v3015_v0, %v3706_v48  ;;  %v2393_v11 = vunpack.c.l.bf16 %v2495_v15 }
 0x401   : > { %v1091_v20 = vpack.c.bf16 %v977_v37, %v976_v23  ;;  %v1090_v36 = vpack.c.bf16 %v928_v57, %v927_v34  ;;  %v1093_v5 = vpack.c.bf16 %v3805_v50, %v3803_v53  ;;  %v1092_v13 = vpack.c.bf16 %v3809_v19, %v3807_v59  ;;  %v1644_v19 = vld [vmem:[%s3342_s16] sm:$0xf] }
 0x402   : > { %v929_v23 = vmul.f32 %v2357_v2, %v3781_v61  ;;  %v980_v48 = vmul.f32 %v2393_v11, %v3823_v17 }
 0x403   : > { %1458 = vmatprep.mubr.bf16.mxu0 %v1091_v20 }
 0x404   : > { %v3017_v51 = vpop.eup %3016  ;;  %1459 = vmatmul.mubr.bf16.vlgmr.msra.gmra.mrb[16].mxu0 %v1090_v36 }
 0x405   : > { %v3826_v47 = vmul.f32 %v3017_v51, %v3715_v1  ;;  %2608 = vmatpush3.bf16.msra.mxu0 %v3591_v27  ;;  %1466 = vmatprep.mubr.bf16.mxu0 %v1095_v14  ;;  %v3019_v31 = vpop.eup %3018  ;;  %v2487_v1 = vld [vmem:[%s4390_s4 + $0x10] sm:$0xff]   ;;  %v1094_v27 = vpack.c.bf16 %v930_v63, %v929_v23  ;;  %v2489_v63 = vld [vmem:[%s4390_s4 + $0x20] sm:$0xff]  }
 0x406   : > { %2609 = vmatprep.subr.bf16.mxu0 %v3593_v28  ;;  %v3021_v34 = vpop.eup %3020  ;;  %v2362_v37 = vunpack.c.h.bf16 %v2487_v1  ;;  %v2496_v28 = vld [vmem:[%s4390_s4 + $0x58] sm:$0xff]   ;;  %v3842_v41 = vmul.f32 %v3019_v31, %v3712_v39  ;;  %v2361_v57 = vunpack.c.l.bf16 %v2487_v1 }
 0x407   : > { %v981_v22 = vmul.f32 %v2394_v16, %v3826_v47  ;;  %v3845_v29 = vmul.f32 %v3021_v34, %v3697_v62  ;;  %v2488_v62 = vld [vmem:[%s4390_s4 + $0x18] sm:$0xff]   ;;  %v2498_v34 = vld [vmem:[%s4390_s4 + $0x68] sm:$0xff]  }
 0x408   : > { %v932_v20 = vmul.f32 %v2362_v37, %v3826_v47  ;;  %v931_v39 = vmul.f32 %v2361_v57, %v3823_v17  ;;  %v2366_v21 = vunpack.c.h.bf16 %v2488_v62 }
 0x409   : > { %2610 = vmatpush3.bf16.msra.mxu0 %v3595_v32  ;;  %v1099_v61 = vpack.c.bf16 %v981_v22, %v980_v48  ;;  %v2398_v32 = vunpack.c.h.bf16 %v2496_v28 }
 0x40a   : > { %2611 = vmatprep.subr.bf16.mxu0 %v3603_v42  ;;  %v2397_v42 = vunpack.c.l.bf16 %v2496_v28  ;;  %v2369_v28 = vunpack.c.l.bf16 %v2489_v63 }
 0x40b   : > { %v983_v36 = vmul.f32 %v2398_v32, %v3842_v41  ;;  %v2406_v32 = vunpack.c.h.bf16 %v2498_v34 }
 0x40c   : > { %1467 = vmatmul.mubr.bf16.gmra.mrb[20].mxu0 %v1094_v27  ;;  %v982_v25 = vmul.f32 %v2397_v42, %v3845_v29 }
 0x40d   : > { %2612 = vmatpush3.bf16.msra.mxu0 %v3607_v43  ;;  %1474 = vmatprep.mubr.bf16.mxu0 %v1099_v61  ;;  %v1098_v43 = vpack.c.bf16 %v932_v20, %v931_v39  ;;  %v2370_v61 = vunpack.c.h.bf16 %v2489_v63 }
 0x40e   : > { %2613 = vmatprep.subr.bf16.mxu0 %v3597_v33  ;;  %v1103_v0 = vpack.c.bf16 %v983_v36, %v982_v25  ;;  %v2365_v33 = vunpack.c.l.bf16 %v2488_v62  ;;  %v2405_v62 = vunpack.c.l.bf16 %v2498_v34 }
 0x410   : > { %v933_v24 = vmul.f32 %v2365_v33, %v3845_v29 }
 0x411   : > { %2614 = vmatpush3.bf16.msra.mxu0 %v3601_v30  ;;  %v934_v30 = vmul.f32 %v2366_v21, %v3842_v41 }
 0x412   : > { %2615 = vmatprep.subr.bf16.mxu0 %v3612_v10 }
 0x413   : > { %v1102_v15 = vpack.c.bf16 %v934_v30, %v933_v24  ;;  %v2512_v24 = vld [vmem:[%s4390_s4 + $0xd8] sm:$0xff]  }
 0x414   : > { %1475 = vmatmul.mubr.bf16.gmra.mrb[24].mxu0 %v1098_v43  ;;  %v2503_v43 = vld [vmem:[%s4390_s4 + $0x90] sm:$0xff]  }
 0x415   : > { %2616 = vmatpush3.bf16.msra.mxu0 %v3614_v46  ;;  %1482 = vmatprep.mubr.bf16.mxu0 %v1103_v0  ;;  %v2426_v21 = vunpack.c.h.bf16 %v2503_v43 }
 0x416   : > { %2617 = vmatprep.subr.bf16.mxu0 %v3694_v26 }
 0x417   : > { %v1030_v63 = vmul.f32 %v2426_v21, %v3826_v47 }
 0x419   : > { %2618 = vmatpush3.bf16.msra.mxu0 %v3701_v58  ;;  %v2497_v58 = vld [vmem:[%s4390_s4 + $0x60] sm:$0xff]  }
 0x41a   : > { %2619 = vmatprep.subr.bf16.mxu0 %v3762_v54  ;;  %v2511_v54 = vld [vmem:[%s4390_s4 + $0xd0] sm:$0xff]   ;;  %v2401_v48 = vunpack.c.l.bf16 %v2497_v58  ;;  %v2402_v37 = vunpack.c.h.bf16 %v2497_v58  ;;  %v2461_v58 = vunpack.c.l.bf16 %v2512_v24 }
 0x41b   : > { %v2458_v11 = vunpack.c.h.bf16 %v2511_v54  ;;  %v2457_v1 = vunpack.c.l.bf16 %v2511_v54 }
 0x41c   : > { %1483 = vmatmul.mubr.bf16.gmra.mrb[28].mxu0 %v1102_v15 }
 0x41d   : > { %2620 = vmatpush3.bf16.msra.mxu0 %v3798_v12 }
 0x425   : > { %v852_v10 = vpop.xlane.xlu0 %851 }
 0x429   : > { %v848_v14 = vpop.xlane.xlu0 %847 }
 0x42a   : > { %3022 = vrcp.f32 %v848_v14  ;;  %v2499_v14 = vld [vmem:[%s4390_s4 + $0x70] sm:$0xff]  }
 0x42b   : > { %3024 = vrcp.f32 %v852_v10  ;;  %v2462_v10 = vunpack.c.h.bf16 %v2512_v24  ;;  %v2410_v18 = vunpack.c.h.bf16 %v2499_v14 }
 0x42d   : > { %v854_v46 = vpop.xlane.xlu0 %853 }
 0x42e   : > { %v850_v16 = vpop.xlane.xlu1 %849  ;;  %3026 = vrcp.f32 %v854_v46 }
 0x42f   : > { %3028 = vrcp.f32 %v850_v16 }
 0x431   : > { %v860_v26 = vpop.xlane.xlu0 %859 }
 0x432   : > { %v862_v51 = vpop.xlane.xlu1 %861 }
 0x434   : > { %v3023_v2 = vpop.eup %3022 }
 0x435   : > { %v856_v12 = vpop.xlane.xlu0 %855  ;;  %v3025_v22 = vpop.eup %3024  ;;  %v3875_v23 = vmul.f32 %v3023_v2, %v3735_v45  ;;  %v1079_v45 = vmul.f32 %v2458_v11, %v3826_v47  ;;  %v2490_v2 = vld [vmem:[%s4390_s4 + $0x28] sm:$0xff]  }
 0x436   : > { %v858_v31 = vpop.xlane.xlu1 %857  ;;  %3030 = vrcp.f32 %v856_v12  ;;  %v3885_v36 = vmul.f32 %v3025_v22, %v3731_v35  ;;  %v1078_v35 = vmul.f32 %v2457_v1, %v3823_v17  ;;  %v2374_v54 = vunpack.c.h.bf16 %v2490_v2 }
 0x437   : > { %3032 = vrcp.f32 %v858_v31  ;;  %v935_v0 = vmul.f32 %v2369_v28, %v3875_v23  ;;  %v2409_v31 = vunpack.c.l.bf16 %v2499_v14  ;;  %v1081_v22 = vmul.f32 %v2462_v10, %v3842_v41 }
 0x438   : > { %v3027_v27 = vpop.eup %3026  ;;  %3034 = vrcp.f32 %v860_v26  ;;  %v1101_v15 = vpack.c.bf16 %v1079_v45, %v1078_v35  ;;  %v986_v26 = vmul.f32 %v2405_v62, %v3885_v36 }
 0x439   : > { %v3029_v57 = vpop.eup %3028  ;;  %v3881_v42 = vmul.f32 %v3027_v27, %v3738_v52  ;;  %v1393_v20 = vpop.permute.xlu0 %1392  ;;  %3036 = vrcp.f32 %v862_v51  ;;  %v984_v52 = vmul.f32 %v2401_v48, %v3875_v23  ;;  %v2425_v51 = vunpack.c.l.bf16 %v2503_v43 }
 0x43a   : > { %v3888_v39 = vmul.f32 %v3029_v57, %v3740_v55  ;;  %v1377_v25 = vpop.permute.xlu1 %1376  ;;  %2621 = vmatprep.subr.bf16.mxu0 %v1393_v20  ;;  %2757 = vmatprep.subr.bf16.mxu1 %v1393_v20  ;;  %v2373_v48 = vunpack.c.l.bf16 %v2490_v2  ;;  %v1080_v27 = vmul.f32 %v2461_v58, %v3845_v29  ;;  %v2491_v20 = vld [vmem:[%s4390_s4 + $0x30] sm:$0xff]  }
 0x43b   : > { %2622 = vmatpush3.bf16.msra.mxu0 %v1377_v25  ;;  %2765 = vmatpush3.bf16.msra.mxu1 %v1377_v25  ;;  %v987_v30 = vmul.f32 %v2406_v32, %v3881_v42  ;;  %v1029_v34 = vmul.f32 %v2425_v51, %v3823_v17  ;;  %v938_v47 = vmul.f32 %v2374_v54, %v3881_v42 }
 0x43c   : > { %v985_v55 = vmul.f32 %v2402_v37, %v3888_v39  ;;  %v936_v33 = vmul.f32 %v2370_v61, %v3888_v39  ;;  %v2504_v37 = vld [vmem:[%s4390_s4 + $0x98] sm:$0xff]   ;;  %v1105_v25 = vpack.c.bf16 %v1081_v22, %v1080_v27  ;;  %v937_v62 = vmul.f32 %v2373_v48, %v3885_v36  ;;  %2774 = vmatprep.subr.msk.bf16.mxu0 %vm1669_vm3, %v1644_v19 }
 0x43d   : > { %v1111_v11 = vpack.c.bf16 %v987_v30, %v986_v26  ;;  %v1100_v61 = vpack.c.bf16 %v1030_v63, %v1029_v34  ;;  %v2430_v57 = vunpack.c.h.bf16 %v2504_v37 }
 0x43e   : > { %1564 = vmatmul.mubr.bf16.vlgmr.msra.gmra.mrb[16].mxu1 %v1096_v38  ;;  %v1107_v46 = vpack.c.bf16 %v985_v55, %v984_v52  ;;  %v1106_v16 = vpack.c.bf16 %v936_v33, %v935_v0  ;;  %v2429_v52 = vunpack.c.l.bf16 %v2504_v37  ;;  %v1110_v55 = vpack.c.bf16 %v938_v47, %v937_v62 }
 0x43f   : > { %1571 = vmatprep.mubr.bf16.mxu1 %v1101_v15  ;;  %v2377_v0 = vunpack.c.l.bf16 %v2491_v20  ;;  %v2378_v33 = vunpack.c.h.bf16 %v2491_v20  ;;  %v1032_v14 = vmul.f32 %v2430_v57, %v3842_v41 }
 0x440   : > { %v3031_v12 = vpop.eup %3030  ;;  %1490 = vmatprep.mubr.bf16.mxu0 %v1107_v46 }
 0x441   : > { %v3033_v60 = vpop.eup %3032  ;;  %v3914_v38 = vmul.f32 %v3031_v12, %v3750_v44  ;;  %1491 = vmatmul.mubr.bf16.gmra.mrb[32].mxu0 %v1106_v16  ;;  %v2513_v44 = vld [vmem:[%s4390_s4 + $0xe0] sm:$0xff]   ;;  %v1031_v16 = vmul.f32 %v2429_v52, %v3845_v29  ;;  %v2514_v29 = vld [vmem:[%s4390_s4 + $0xe8] sm:$0xff]   ;;  %v2492_v12 = vld [vmem:[%s4390_s4 + $0x38] sm:$0xff]  }
 0x442   : > { %v3918_v1 = vmul.f32 %v3033_v60, %v3752_v49  ;;  %1498 = vmatprep.mubr.bf16.mxu0 %v1111_v11  ;;  %v2500_v49 = vld [vmem:[%s4390_s4 + $0x78] sm:$0xff]   ;;  %v3035_v28 = vpop.eup %3034  ;;  %v2466_v43 = vunpack.c.h.bf16 %v2513_v44  ;;  %v2465_v35 = vunpack.c.l.bf16 %v2513_v44  ;;  %v2470_v63 = vunpack.c.h.bf16 %v2514_v29  ;;  %v2515_v44 = vld [vmem:[%s4390_s4 + $0xf0] sm:$0xff]  }
 0x443   : > { %v988_v17 = vmul.f32 %v2409_v31, %v3914_v38  ;;  %v3037_v45 = vpop.eup %3036  ;;  %v2413_v21 = vunpack.c.l.bf16 %v2500_v49  ;;  %v2414_v30 = vunpack.c.h.bf16 %v2500_v49  ;;  %v3942_v15 = vmul.f32 %v3035_v28, %v3744_v56  ;;  %v2505_v56 = vld [vmem:[%s4390_s4 + $0xa0] sm:$0xff]  }
 0x444   : > { %v989_v32 = vmul.f32 %v2410_v18, %v3918_v1  ;;  %v3939_v24 = vmul.f32 %v3037_v45, %v3746_v40  ;;  %v1083_v46 = vmul.f32 %v2466_v43, %v3888_v39  ;;  %v1082_v26 = vmul.f32 %v2465_v35, %v3875_v23  ;;  %v2507_v35 = vld [vmem:[%s4390_s4 + $0xb0] sm:$0xff]  }
 0x445   : > { %v939_v51 = vmul.f32 %v2377_v0, %v3914_v38  ;;  %v940_v2 = vmul.f32 %v2378_v33, %v3918_v1  ;;  %v1104_v40 = vpack.c.bf16 %v1032_v14, %v1031_v16  ;;  %v990_v58 = vmul.f32 %v2413_v21, %v3942_v15 }
 0x446   : > { %1572 = vmatmul.mubr.bf16.gmra.mrb[20].mxu1 %v1100_v61  ;;  %v1115_v10 = vpack.c.bf16 %v989_v32, %v988_v17  ;;  %v991_v41 = vmul.f32 %v2414_v30, %v3939_v24  ;;  %v2434_v54 = vunpack.c.h.bf16 %v2505_v56  ;;  %v1109_v11 = vpack.c.bf16 %v1083_v46, %v1082_v26 }
 0x447   : > { %1579 = vmatprep.mubr.bf16.mxu1 %v1105_v25  ;;  %v2433_v31 = vunpack.c.l.bf16 %v2505_v56  ;;  %v1114_v18 = vpack.c.bf16 %v940_v2, %v939_v51  ;;  %v2469_v60 = vunpack.c.l.bf16 %v2514_v29  ;;  %v2381_v22 = vunpack.c.l.bf16 %v2492_v12 }
 0x448   : > { %v2382_v48 = vunpack.c.h.bf16 %v2492_v12  ;;  %v1119_v34 = vpack.c.bf16 %v991_v41, %v990_v58  ;;  %v1034_v27 = vmul.f32 %v2434_v54, %v3888_v39  ;;  %v1085_v47 = vmul.f32 %v2470_v63, %v3881_v42  ;;  %v2506_v39 = vld [vmem:[%s4390_s4 + $0xa8] sm:$0xff]  }
 0x449   : > { %1499 = vmatmul.mubr.bf16.gmra.mrb[36].mxu0 %v1110_v55  ;;  %v1033_v37 = vmul.f32 %v2433_v31, %v3875_v23  ;;  %v1084_v49 = vmul.f32 %v2469_v60, %v3885_v36  ;;  %v941_v28 = vmul.f32 %v2381_v22, %v3942_v15  ;;  %v2438_v32 = vunpack.c.h.bf16 %v2506_v39  ;;  %v2516_v55 = vld [vmem:[%s4390_s4 + $0xf8] sm:$0xff]  }
 0x44a   : > { %1506 = vmatprep.mubr.bf16.mxu0 %v1115_v10  ;;  %v942_v61 = vmul.f32 %v2382_v48, %v3939_v24  ;;  %v2473_v20 = vunpack.c.l.bf16 %v2515_v44  ;;  %v2474_v45 = vunpack.c.h.bf16 %v2515_v44  ;;  %v2437_v23 = vunpack.c.l.bf16 %v2506_v39 }
 0x44b   : > { %v1108_v17 = vpack.c.bf16 %v1034_v27, %v1033_v37  ;;  %v1113_v57 = vpack.c.bf16 %v1085_v47, %v1084_v49  ;;  %v1036_v62 = vmul.f32 %v2438_v32, %v3881_v42  ;;  %v2441_v0 = vunpack.c.l.bf16 %v2507_v35 }
 0x44c   : > { %v1118_v25 = vpack.c.bf16 %v942_v61, %v941_v28  ;;  %v1086_v43 = vmul.f32 %v2473_v20, %v3914_v38  ;;  %v1087_v52 = vmul.f32 %v2474_v45, %v3918_v1  ;;  %v1035_v21 = vmul.f32 %v2437_v23, %v3885_v36  ;;  %v2508_v36 = vld [vmem:[%s4390_s4 + $0xb8] sm:$0xff]  }
 0x44d   : > { %v2442_v33 = vunpack.c.h.bf16 %v2507_v35  ;;  %v2477_v10 = vunpack.c.l.bf16 %v2516_v55  ;;  %v2478_v14 = vunpack.c.h.bf16 %v2516_v55  ;;  %v1037_v46 = vmul.f32 %v2441_v0, %v3914_v38 }
 0x44e   : > { %1580 = vmatmul.mubr.bf16.gmra.mrb[24].mxu1 %v1104_v40  ;;  %v1112_v42 = vpack.c.bf16 %v1036_v62, %v1035_v21  ;;  %v1117_v30 = vpack.c.bf16 %v1087_v52, %v1086_v43  ;;  %v2445_v26 = vunpack.c.l.bf16 %v2508_v36  ;;  %v2446_v51 = vunpack.c.h.bf16 %v2508_v36 }
 0x44f   : > { %1587 = vmatprep.mubr.bf16.mxu1 %v1109_v11  ;;  %v1038_v53 = vmul.f32 %v2442_v33, %v3918_v1  ;;  %v1088_v50 = vmul.f32 %v2477_v10, %v3942_v15 }
 0x450   : > { %v1039_v38 = vmul.f32 %v2445_v26, %v3942_v15  ;;  %v1040_v1 = vmul.f32 %v2446_v51, %v3939_v24 }
 0x451   : > { %1507 = vmatmul.mubr.bf16.gmra.mrb[40].mxu0 %v1114_v18  ;;  %v1116_v16 = vpack.c.bf16 %v1038_v53, %v1037_v46 }
 0x452   : > { %1514 = vmatprep.mubr.bf16.mxu0 %v1119_v34  ;;  %v1120_v59 = vpack.c.bf16 %v1040_v1, %v1039_v38 }
 0x456   : > { %1588 = vmatmul.mubr.bf16.gmra.mrb[28].mxu1 %v1108_v17 }
 0x457   : > { %1595 = vmatprep.mubr.bf16.mxu1 %v1113_v57 }
 0x459   : > { %1515 = vmatmul.mubr.bf16.gmra.mrb[44].mxu0 %v1118_v25 }
 0x45a   : > { %1555 = vmatprep.mubr.bf16.mxu0 %v1093_v5  ;;  %v1089_v5 = vmul.f32 %v2478_v14, %v3939_v24 }
 0x45c   : > { %v1121_v2 = vpack.c.bf16 %v1089_v5, %v1088_v50 }
 0x45e   : > { %1596 = vmatmul.mubr.bf16.gmra.mrb[32].mxu1 %v1112_v42 }
 0x45f   : > { %1603 = vmatprep.mubr.bf16.mxu1 %v1117_v30 }
 0x461   : > { %1556 = vmatmul.mubr.bf16.vlgmr.msra.gmra.mrb[48].mxu0 %v1092_v13  ;;  %v1671_v13 = vsel %vm1669_vm3, %v1644_v19, 0 }
 0x462   : > { %2733 = vmatpush3.bf16.msra.mxu0 %v1671_v13 }
 0x466   : > { %1604 = vmatmul.mubr.bf16.gmra.mrb[36].mxu1 %v1116_v16 }
 0x467   : > { %1611 = vmatprep.mubr.bf16.mxu1 %v1121_v2 }
 0x46e   : > { %1612 = vmatmul.mubr.bf16.gmra.mrb[40].mxu1 %v1120_v59 }
 0x4d7   : > { %v2559_v56 = vpop.f32.mrb[16].mxu0 }
 0x4d8   : > { %v2560_v40 = vpop.f32.mrb[17].mxu0 }
 0x4d9   : > { %v3999_v58 = vadd.f32 %v2560_v40, %v2559_v56  ;;  %v2562_v41 = vpop.f32.mrb[18].mxu0 }
 0x4da   : > { %v2563_v54 = vpop.f32.mrb[19].mxu0 }
 0x4db   : > { %v4001_v29 = vadd.f32 %v2563_v54, %v2562_v41 }
 0x4df   : > { %v2565_v12 = vpop.f32.mrb[20].mxu0 }
 0x4e0   : > { %v2566_v11 = vpop.f32.mrb[21].mxu0 }
 0x4e1   : > { %v2567_v15 = vadd.f32 %v2566_v11, %v2565_v12  ;;  %v2568_v63 = vpop.f32.mrb[22].mxu0 }
 0x4e2   : > { %v2569_v24 = vpop.f32.mrb[23].mxu0 }
 0x4e3   : > { %v2570_v31 = vadd.f32 %v2569_v24, %v2568_v63 }
 0x4e7   : > { %v2571_v18 = vpop.f32.mrb[24].mxu0 }
 0x4e8   : > { %v2572_v60 = vpop.f32.mrb[25].mxu0 }
 0x4e9   : > { %v2573_v22 = vadd.f32 %v2572_v60, %v2571_v18  ;;  %v2574_v48 = vpop.f32.mrb[26].mxu0 }
 0x4ea   : > { %v2575_v34 = vpop.f32.mrb[27].mxu0 }
 0x4eb   : > { %v2576_v27 = vadd.f32 %v2575_v34, %v2574_v48 }
 0x4ef   : > { %v2577_v47 = vpop.f32.mrb[28].mxu0 }
 0x4f0   : > { %v2578_v37 = vpop.f32.mrb[29].mxu0 }
 0x4f1   : > { %v2579_v44 = vadd.f32 %v2578_v37, %v2577_v47  ;;  %v2580_v49 = vpop.f32.mrb[30].mxu0 }
 0x4f2   : > { %v2581_v28 = vpop.f32.mrb[31].mxu0 }
 0x4f3   : > { %v2582_v61 = vadd.f32 %v2581_v28, %v2580_v49 }
 0x511   : > { %v2629_v39 = vpop.f32.mrb[16].mxu1 }
 0x512   : > { %v2630_v17 = vpop.f32.mrb[17].mxu1 }
 0x513   : > { %v2631_v32 = vadd.f32 %v2630_v17, %v2629_v39  ;;  %v2632_v57 = vpop.f32.mrb[18].mxu1 }
 0x514   : > { %v2583_v20 = vpop.f32.mrb[32].mxu0  ;;  %v2633_v45 = vpop.f32.mrb[19].mxu1 }
 0x515   : > { %v4003_v23 = vadd.f32 %v2631_v32, %v2567_v15  ;;  %v2584_v25 = vpop.f32.mrb[33].mxu0  ;;  %v2634_v62 = vadd.f32 %v2633_v45, %v2632_v57 }
 0x516   : > { %v2585_v43 = vadd.f32 %v2584_v25, %v2583_v20  ;;  %v2586_v52 = vpop.f32.mrb[34].mxu0 }
 0x517   : > { %v4005_v35 = vadd.f32 %v2634_v62, %v2570_v31  ;;  %v2587_v21 = vpop.f32.mrb[35].mxu0 }
 0x518   : > { %v2588_v55 = vadd.f32 %v2587_v21, %v2586_v52 }
 0x519   : > { %v1637_v42 = vpack.c.bf16 %v4005_v35, %v4003_v23  ;;  %v2635_v0 = vpop.f32.mrb[20].mxu1  ;;  %v1622_v35 = vld [vmem:[%s3347_s25 + $0x10] sm:$0xff] }
 0x51a   : > { %v2636_v33 = vpop.f32.mrb[21].mxu1 }
 0x51b   : > { %v2637_v30 = vadd.f32 %v2636_v33, %v2635_v0  ;;  %v2638_v10 = vpop.f32.mrb[22].mxu1 }
 0x51c   : > { %v2589_v14 = vpop.f32.mrb[36].mxu0  ;;  %v2639_v46 = vpop.f32.mrb[23].mxu1 }
 0x51d   : > { %v4009_v53 = vadd.f32 %v2637_v30, %v2573_v22  ;;  %v2590_v50 = vpop.f32.mrb[37].mxu0  ;;  %v2640_v5 = vadd.f32 %v2639_v46, %v2638_v10 }
 0x51e   : > { %v2591_v36 = vadd.f32 %v2590_v50, %v2589_v14  ;;  %v2592_v16 = vpop.f32.mrb[38].mxu0 }
 0x51f   : > { %v4011_v26 = vadd.f32 %v2640_v5, %v2576_v27  ;;  %v2593_v51 = vpop.f32.mrb[39].mxu0 }
 0x520   : > { %v2594_v2 = vadd.f32 %v2593_v51, %v2592_v16 }
 0x521   : > { %v1638_v38 = vpack.c.bf16 %v4011_v26, %v4009_v53  ;;  %v2641_v1 = vpop.f32.mrb[24].mxu1 }
 0x522   : > { %v2642_v59 = vpop.f32.mrb[25].mxu1 }
 0x523   : > { %v2643_v19 = vadd.f32 %v2642_v59, %v2641_v1  ;;  %v2644_v13 = vpop.f32.mrb[26].mxu1 }
 0x524   : > { %v2595_v56 = vpop.f32.mrb[40].mxu0  ;;  %v2645_v40 = vpop.f32.mrb[27].mxu1 }
 0x525   : > { %v4015_v41 = vadd.f32 %v2643_v19, %v2579_v44  ;;  %v2596_v54 = vpop.f32.mrb[41].mxu0  ;;  %v2646_v12 = vadd.f32 %v2645_v40, %v2644_v13 }
 0x526   : > { %v2597_v11 = vadd.f32 %v2596_v54, %v2595_v56  ;;  %v2598_v15 = vpop.f32.mrb[42].mxu0 }
 0x527   : > { %v1585_v63 = vadd.f32 %v2646_v12, %v2582_v61  ;;  %v2599_v24 = vpop.f32.mrb[43].mxu0 }
 0x528   : > { %v2600_v31 = vadd.f32 %v2599_v24, %v2598_v15 }
 0x529   : > { %v1639_v18 = vpack.c.bf16 %v1585_v63, %v4015_v41  ;;  %v2647_v60 = vpop.f32.mrb[28].mxu1  ;;  %v1623_v63 = vld [vmem:[%s3347_s25 + $0x18] sm:$0xff] }
 0x52a   : > { %v2648_v22 = vpop.f32.mrb[29].mxu1 }
 0x52b   : > { %v2649_v48 = vadd.f32 %v2648_v22, %v2647_v60  ;;  %v2650_v34 = vpop.f32.mrb[30].mxu1 }
 0x52c   : > { %v2601_v27 = vpop.f32.mrb[44].mxu0  ;;  %v2651_v47 = vpop.f32.mrb[31].mxu1 }
 0x52d   : > { %v1590_v37 = vadd.f32 %v2649_v48, %v2585_v43  ;;  %v2602_v49 = vpop.f32.mrb[45].mxu0  ;;  %v2652_v28 = vadd.f32 %v2651_v47, %v2650_v34  ;;  %v1626_v47 = vld [vmem:[%s3347_s25 + $0x30] sm:$0xff] }
 0x52e   : > { %v2603_v44 = vadd.f32 %v2602_v49, %v2601_v27  ;;  %v2604_v39 = vpop.f32.mrb[46].mxu0 }
 0x52f   : > { %v1593_v17 = vadd.f32 %v2652_v28, %v2588_v55  ;;  %v2605_v32 = vpop.f32.mrb[47].mxu0  ;;  %v1627_v28 = vld [vmem:[%s3347_s25 + $0x38] sm:$0xff] }
 0x530   : > { %v2606_v57 = vadd.f32 %v2605_v32, %v2604_v39 }
 0x531   : > { %v1640_v20 = vpack.c.bf16 %v1593_v17, %v1590_v37  ;;  %v2653_v61 = vpop.f32.mrb[32].mxu1  ;;  %v1624_v37 = vld [vmem:[%s3347_s25 + $0x20] sm:$0xff]  ;;  %v1625_v17 = vld [vmem:[%s3347_s25 + $0x28] sm:$0xff] }
 0x532   : > { %v2654_v45 = vpop.f32.mrb[33].mxu1 }
 0x533   : > { %v2655_v25 = vadd.f32 %v2654_v45, %v2653_v61  ;;  %v2656_v62 = vpop.f32.mrb[34].mxu1 }
 0x534   : > { %v2623_v52 = vpop.f32.mrb[48].mxu0  ;;  %v2657_v21 = vpop.f32.mrb[35].mxu1 }
 0x535   : > { %v1598_v0 = vadd.f32 %v2655_v25, %v2591_v36  ;;  %v2624_v33 = vpop.f32.mrb[49].mxu0  ;;  %v2658_v30 = vadd.f32 %v2657_v21, %v2656_v62  ;;  %v1630_v25 = vld [vmem:[%s3347_s25 + $0x50] sm:$0xff]  ;;  %v1628_v62 = vld [vmem:[%s3347_s25 + $0x40] sm:$0xff]  ;;  %v1631_v21 = vld [vmem:[%s3347_s25 + $0x58] sm:$0xff] }
 0x536   : > { %v2625_v10 = vadd.f32 %v2624_v33, %v2623_v52  ;;  %v2626_v14 = vpop.f32.mrb[50].mxu0 }
 0x537   : > { %v1601_v43 = vadd.f32 %v2658_v30, %v2594_v2  ;;  %v2627_v46 = vpop.f32.mrb[51].mxu0  ;;  %v1629_v30 = vld [vmem:[%s3347_s25 + $0x48] sm:$0xff] }
 0x538   : > { %v1558_v53 = vadd.f32 %v2625_v10, %v3999_v58  ;;  %v2628_v50 = vadd.f32 %v2627_v46, %v2626_v14 }
 0x539   : > { %v1641_v55 = vpack.c.bf16 %v1601_v43, %v1598_v0  ;;  %v2659_v5 = vpop.f32.mrb[36].mxu1 }
 0x53a   : > { %v1561_v16 = vadd.f32 %v2628_v50, %v4001_v29  ;;  %v2660_v26 = vpop.f32.mrb[37].mxu1  ;;  %v1634_v50 = vld [vmem:[%s3347_s25 + $0x70] sm:$0xff] }
 0x53b   : > { %v2661_v51 = vadd.f32 %v2660_v26, %v2659_v5  ;;  %v2662_v1 = vpop.f32.mrb[38].mxu1 }
 0x53c   : > { %v1636_v59 = vpack.c.bf16 %v1561_v16, %v1558_v53  ;;  %v2663_v19 = vpop.f32.mrb[39].mxu1  ;;  %v1635_v16 = vld [vmem:[%s3347_s25 + $0x78] sm:$0xff] }
 0x53d   : > { %v1606_v13 = vadd.f32 %v2661_v51, %v2597_v11  ;;  %v2664_v36 = vadd.f32 %v2663_v19, %v2662_v1  ;;  %v1633_v1 = vld [vmem:[%s3347_s25 + $0x68] sm:$0xff] }
 0x53e   : > { %2734 = vmatprep.mubr.msk.bf16.mxu0 %vm557_vm2, %v1636_v59 }
 0x53f   : > { %v1609_v56 = vadd.f32 %v2664_v36, %v2600_v31  ;;  %2735 = vmatmul.mubr.msk.bf16.vlgmr.msra.gmra.mrb[52].mxu0 %vm557_vm2, %v1637_v42  ;;  %v1620_v42 = vld [vmem:[%s3347_s25] sm:$0xff] }
 0x540   : > { %2738 = vmatprep.mubr.msk.bf16.mxu0 %vm557_vm2, %v1638_v38 }
 0x541   : > { %v1642_v58 = vpack.c.bf16 %v1609_v56, %v1606_v13  ;;  %v2665_v29 = vpop.f32.mrb[40].mxu1 }
 0x542   : > { %v2666_v2 = vpop.f32.mrb[41].mxu1 }
 0x543   : > { %v2667_v40 = vadd.f32 %v2666_v2, %v2665_v29  ;;  %v2668_v41 = vpop.f32.mrb[42].mxu1 }
 0x544   : > { %v2669_v54 = vpop.f32.mrb[43].mxu1 }
 0x545   : > { %v1614_v12 = vadd.f32 %v2667_v40, %v2603_v44  ;;  %v2670_v11 = vadd.f32 %v2669_v54, %v2668_v41 }
 0x547   : > { %v1617_v15 = vadd.f32 %v2670_v11, %v2606_v57  ;;  %2739 = vmatmul.mubr.msk.bf16.gmra.mrb[56].mxu0 %vm557_vm2, %v1639_v18  ;;  %v1621_v18 = vld [vmem:[%s3347_s25 + $0x8] sm:$0xff] }
 0x548   : > { %2742 = vmatprep.mubr.msk.bf16.mxu0 %vm557_vm2, %v1640_v20 }
 0x549   : > { %v1643_v23 = vpack.c.bf16 %v1617_v15, %v1614_v12 }
 0x54f   : > { %2743 = vmatmul.mubr.msk.bf16.gmra.mrb[60].mxu0 %vm557_vm2, %v1641_v55  ;;  %v1632_v55 = vld [vmem:[%s3347_s25 + $0x60] sm:$0xff] }
 0x550   : > { %2746 = vmatprep.mubr.msk.bf16.mxu0 %vm557_vm2, %v1642_v58 }
 0x557   : > { %2747 = vmatmul.mubr.msk.bf16.gmra.mrb[64].mxu0 %vm557_vm2, %v1643_v23 }
 0x612   : > { %v2736_v38 = vpop.f32.mrb[52].mxu0 }
 0x613   : > { %v1772_v24 = vadd.f32 %v2736_v38, %v1622_v35  ;;  %v1707_v31 = vpop.f32.mrb[53].mxu0 }
 0x614   : > { %v1770_v60 = vadd.f32 %v1707_v31, %v1620_v42  ;;  %v2737_v22 = vpop.f32.mrb[54].mxu0 }
 0x615   : > { %1788 = vst.msk [vmem:[%s3347_s25 + $0x10] sm:$0xff] %vm403_vm1, %v1772_v24  ;;  %v1773_v48 = vadd.f32 %v2737_v22, %v1623_v63  ;;  %v1710_v34 = vpop.f32.mrb[55].mxu0 }
 0x616   : > { %1786 = vst.msk [vmem:[%s3347_s25] sm:$0xff] %vm403_vm1, %v1770_v60  ;;  %v1771_v27 = vadd.f32 %v1710_v34, %v1621_v18  ;;  %v4419_v18 = vld [vmem:[#allocation6_spill] sm:$0xff] (!%p2310_p6) }
 0x617   : > { %1789 = vst.msk [vmem:[%s3347_s25 + $0x18] sm:$0xff] %vm403_vm1, %v1773_v48 }
 0x618   : > { %1787 = vst.msk [vmem:[%s3347_s25 + $0x8] sm:$0xff] %vm403_vm1, %v1771_v27 }
 0x61a   : > { %v2740_v49 = vpop.f32.mrb[56].mxu0 }
 0x61b   : > { %v1776_v44 = vadd.f32 %v2740_v49, %v1626_v47  ;;  %v1723_v39 = vpop.f32.mrb[57].mxu0  ;;  %v4421_v47 = vld [vmem:[#allocation8_spill] sm:$0xff] (!%p2310_p6)  ;;  %v4422_v49 = vld [vmem:[#allocation9_spill] sm:$0xff] (!%p2310_p6) }
 0x61c   : > { %v1774_v32 = vadd.f32 %v1723_v39, %v1624_v37  ;;  %v2741_v57 = vpop.f32.mrb[58].mxu0  ;;  %v1808_v29 = vld [vmem:[%s3347_s25 + $0x10] sm:$0xff] (!%p2310_p6) }
 0x61d   : > { %1792 = vst.msk [vmem:[%s3347_s25 + $0x30] sm:$0xff] %vm403_vm1, %v1776_v44  ;;  %v1777_v20 = vadd.f32 %v2741_v57, %v1627_v28  ;;  %v1726_v61 = vpop.f32.mrb[59].mxu0  ;;  %v1806_v58 = vld [vmem:[%s3347_s25] sm:$0xff] (!%p2310_p6)  ;;  %v4087_v41 = vadd.f32 (!%p2310_p6), %v1808_v29, %v3391_v6 }
 0x61e   : > { %1790 = vst.msk [vmem:[%s3347_s25 + $0x20] sm:$0xff] %vm403_vm1, %v1774_v32  ;;  %v1775_v45 = vadd.f32 %v1726_v61, %v1625_v17  ;;  %v4084_v40 = vadd.f32 (!%p2310_p6), %v1806_v58, %v3383_v3  ;;  %v1809_v12 = vld [vmem:[%s3347_s25 + $0x18] sm:$0xff] (!%p2310_p6)  ;;  %v4423_v57 = vld [vmem:[#allocation10_spill] sm:$0xff] (!%p2310_p6)  ;;  %v4424_v61 = vld [vmem:[#allocation11_spill] sm:$0xff] (!%p2310_p6) }
 0x61f   : > { %1793 = vst.msk [vmem:[%s3347_s25 + $0x38] sm:$0xff] %vm403_vm1, %v1777_v20  ;;  %v1807_v2 = vld [vmem:[%s3347_s25 + $0x8] sm:$0xff] (!%p2310_p6)  ;;  %v4094_v11 = vadd.f32 (!%p2310_p6), %v1809_v12, %v3394_v7  ;;  %v1844_v3 = vsel (!%p2310_p6), %vm403_vm1, %v4087_v41, 0.0 }
 0x620   : > { %1791 = vst.msk [vmem:[%s3347_s25 + $0x28] sm:$0xff] %vm403_vm1, %v1775_v45  ;;  %v4090_v54 = vadd.f32 (!%p2310_p6), %v1807_v2, %v3386_v4  ;;  %v1838_v35 = vsel (!%p2310_p6), %vm403_vm1, %v4084_v40, 0.0  ;;  %1845 = vadd.xlane.f32.xlu1 (!%p2310_p6), %v1844_v3 }
 0x621   : > { %1839 = vadd.xlane.f32.xlu0 (!%p2310_p6), %v1838_v35  ;;  %v1847_v6 = vsel (!%p2310_p6), %vm403_vm1, %v4094_v11, 0.0 }
 0x622   : > { %v2744_v52 = vpop.f32.mrb[60].mxu0  ;;  %v1841_v4 = vsel (!%p2310_p6), %vm403_vm1, %v4090_v54, 0.0 }
 0x623   : > { %v1780_v0 = vadd.f32 %v2744_v52, %v1630_v25  ;;  %v1739_v33 = vpop.f32.mrb[61].mxu0 }
 0x624   : > { %v1778_v10 = vadd.f32 %v1739_v33, %v1628_v62  ;;  %v2745_v14 = vpop.f32.mrb[62].mxu0  ;;  %v1812_v38 = vld [vmem:[%s3347_s25 + $0x30] sm:$0xff] (!%p2310_p6)  ;;  %1848 = vadd.xlane.f32.xlu1 (!%p2310_p6), %v1847_v6 }
 0x625   : > { %1796 = vst.msk [vmem:[%s3347_s25 + $0x50] sm:$0xff] %vm403_vm1, %v1780_v0  ;;  %v1781_v43 = vadd.f32 %v2745_v14, %v1631_v21  ;;  %v1742_v46 = vpop.f32.mrb[63].mxu0  ;;  %v1810_v15 = vld [vmem:[%s3347_s25 + $0x20] sm:$0xff] (!%p2310_p6)  ;;  %1842 = vadd.xlane.f32.xlu0 (!%p2310_p6), %v1841_v4  ;;  %v4119_v60 = vadd.f32 (!%p2310_p6), %v1812_v38, %v4419_v18  ;;  %v4425_v0 = vld [vmem:[#allocation12_spill] sm:$0xff] (!%p2310_p6) }
 0x626   : > { %1794 = vst.msk [vmem:[%s3347_s25 + $0x40] sm:$0xff] %vm403_vm1, %v1778_v10  ;;  %v1779_v53 = vadd.f32 %v1742_v46, %v1629_v30  ;;  %v4107_v7 = vadd.f32 (!%p2310_p6), %v1810_v15, %v3397_v8  ;;  %v1813_v63 = vld [vmem:[%s3347_s25 + $0x38] sm:$0xff] (!%p2310_p6)  ;;  %v4420_v8 = vld [vmem:[#allocation7_spill] sm:$0xff] (!%p2310_p6) }
 0x627   : > { %1797 = vst.msk [vmem:[%s3347_s25 + $0x58] sm:$0xff] %vm403_vm1, %v1781_v43  ;;  %v1811_v23 = vld [vmem:[%s3347_s25 + $0x28] sm:$0xff] (!%p2310_p6)  ;;  %v4122_v22 = vadd.f32 (!%p2310_p6), %v1813_v63, %v4420_v8  ;;  %v1856_v34 = vsel (!%p2310_p6), %vm403_vm1, %v4119_v60, 0.0  ;;  %v4426_v30 = vld [vmem:[#allocation13_spill] sm:$0xff] (!%p2310_p6) }
 0x628   : > { %1795 = vst.msk [vmem:[%s3347_s25 + $0x48] sm:$0xff] %vm403_vm1, %v1779_v53  ;;  %v4110_v42 = vadd.f32 (!%p2310_p6), %v1811_v23, %v3400_v9  ;;  %v1850_v24 = vsel (!%p2310_p6), %vm403_vm1, %v4107_v7, 0.0 }
 0x629   : > { %1851 = vadd.xlane.f32.xlu0 (!%p2310_p6), %v1850_v24  ;;  %v1859_v27 = vsel (!%p2310_p6), %vm403_vm1, %v4122_v22, 0.0 }
 0x62a   : > { %v2748_v5 = vpop.f32.mrb[64].mxu0  ;;  %1805 = sbr.rel (%p2310_p6) target bundleno = 1914 (0x77a), region = 56  ;;  %v1853_v31 = vsel (!%p2310_p6), %vm403_vm1, %v4110_v42, 0.0 }
 0x62b   : > { %v1784_v26 = vadd.f32 %v2748_v5, %v1634_v50  ;;  %v1755_v51 = vpop.f32.mrb[65].mxu0  ;;  %1854 = vadd.xlane.f32.xlu1 (!%p2310_p6), %v1853_v31  ;;  %v4427_v50 = vld [vmem:[#allocation14_spill] sm:$0xff] (!%p2310_p6)  ;;  %v4428_v5 = vld [vmem:[#allocation15_spill] sm:$0xff] (!%p2310_p6) }
 0x62c   : > { %v1782_v59 = vadd.f32 %v1755_v51, %v1632_v55  ;;  %v2749_v19 = vpop.f32.mrb[66].mxu0  ;;  %v1816_v44 = vld [vmem:[%s3347_s25 + $0x50] sm:$0xff] (!%p2310_p6) }
 0x62d   : > { %1800 = vst.msk [vmem:[%s3347_s25 + $0x70] sm:$0xff] %vm403_vm1, %v1784_v26  ;;  %v1785_v13 = vadd.f32 %v2749_v19, %v1635_v16  ;;  %v1758_v36 = vpop.f32.mrb[67].mxu0  ;;  %v1814_v9 = vld [vmem:[%s3347_s25 + $0x40] sm:$0xff] (!%p2310_p6)  ;;  %1857 = vadd.xlane.f32.xlu0 (!%p2310_p6), %v1856_v34  ;;  %v4143_v20 = vadd.f32 (!%p2310_p6), %v1816_v44, %v4423_v57 }
 0x62e   : > { %1798 = vst.msk [vmem:[%s3347_s25 + $0x60] sm:$0xff] %vm403_vm1, %v1782_v59  ;;  %v1783_v56 = vadd.f32 %v1758_v36, %v1633_v1  ;;  %v4131_v37 = vadd.f32 (!%p2310_p6), %v1814_v9, %v4421_v47  ;;  %v1817_v39 = vld [vmem:[%s3347_s25 + $0x58] sm:$0xff] (!%p2310_p6) }
 0x62f   : > { %1801 = vst.msk [vmem:[%s3347_s25 + $0x78] sm:$0xff] %vm403_vm1, %v1785_v13  ;;  %v1815_v48 = vld [vmem:[%s3347_s25 + $0x48] sm:$0xff] (!%p2310_p6)  ;;  %1860 = vadd.xlane.f32.xlu1 (!%p2310_p6), %v1859_v27  ;;  %v4146_v45 = vadd.f32 (!%p2310_p6), %v1817_v39, %v4424_v61  ;;  %v1868_v52 = vsel (!%p2310_p6), %vm403_vm1, %v4143_v20, 0.0 }
 0x630   : > { %1799 = vst.msk [vmem:[%s3347_s25 + $0x68] sm:$0xff] %vm403_vm1, %v1783_v56  ;;  %v4134_v28 = vadd.f32 (!%p2310_p6), %v1815_v48, %v4422_v49  ;;  %v1862_v17 = vsel (!%p2310_p6), %vm403_vm1, %v4131_v37, 0.0 }
 0x631   : > { %1863 = vadd.xlane.f32.xlu0 %v1862_v17  ;;  %v1871_v21 = vsel %vm403_vm1, %v4146_v45, 0.0 }
 0x632   : > { %v1865_v32 = vsel %vm403_vm1, %v4134_v28, 0.0 }
 0x633   : > { %1866 = vadd.xlane.f32.xlu1 %v1865_v32 }
 0x634   : > { %v1820_v14 = vld [vmem:[%s3347_s25 + $0x70] sm:$0xff] }
 0x635   : > { %v1818_v25 = vld [vmem:[%s3347_s25 + $0x60] sm:$0xff]  ;;  %1869 = vadd.xlane.f32.xlu0 %v1868_v52  ;;  %v4167_v55 = vadd.f32 %v1820_v14, %v4427_v50 }
 0x636   : > { %v4155_v33 = vadd.f32 %v1818_v25, %v4425_v0  ;;  %v1821_v43 = vld [vmem:[%s3347_s25 + $0x78] sm:$0xff] }
 0x637   : > { %v1819_v62 = vld [vmem:[%s3347_s25 + $0x68] sm:$0xff]  ;;  %1872 = vadd.xlane.f32.xlu1 %v1871_v21  ;;  %v4170_v16 = vadd.f32 %v1821_v43, %v4428_v5  ;;  %v1880_v26 = vsel %vm403_vm1, %v4167_v55, 0.0 }
 0x638   : > { %v4158_v10 = vadd.f32 %v1819_v62, %v4426_v30  ;;  %v1874_v46 = vsel %vm403_vm1, %v4155_v33, 0.0 }
 0x639   : > { %1875 = vadd.xlane.f32.xlu0 %v1874_v46  ;;  %v1883_v51 = vsel %vm403_vm1, %v4170_v16, 0.0 }
 0x63a   : > { %v1877_v53 = vsel %vm403_vm1, %v4158_v10, 0.0 }
 0x63b   : > { %1878 = vadd.xlane.f32.xlu1 %v1877_v53 }
 0x63d   : > { %1881 = vadd.xlane.f32.xlu0 %v1880_v26 }
 0x63f   : > { %1884 = vadd.xlane.f32.xlu1 %v1883_v51 }
 0x6ad   : > { %v1846_v59 = vpop.xlane.xlu1 %1845 }
 0x6ae   : > { %v1840_v1 = vpop.xlane.xlu0 %1839  ;;  %v1889_v13 = vmul.f32 0.03125, %v1846_v59 }
 0x6af   : > { %v1887_v19 = vmul.f32 0.03125, %v1840_v1 }
 0x6b0   : > { %v4180_v56 = vsub.f32 %v4087_v41, %v1889_v13 }
 0x6b1   : > { %v4177_v36 = vsub.f32 %v4084_v40, %v1887_v19  ;;  %v1849_v29 = vpop.xlane.xlu1 %1848 }
 0x6b2   : > { %v1843_v58 = vpop.xlane.xlu0 %1842  ;;  %v1890_v12 = vmul.f32 0.03125, %v1849_v29  ;;  %v1921_v23 = vmul.f32 %v4180_v56, %v4180_v56 }
 0x6b3   : > { %v1888_v2 = vmul.f32 0.03125, %v1843_v58  ;;  %v1919_v15 = vmul.f32 %v4177_v36, %v4177_v36 }
 0x6b4   : > { %v4190_v3 = vsub.f32 %v4094_v11, %v1890_v12  ;;  %v1941_v6 = vsel %vm403_vm1, %v1921_v23, 0.0 }
 0x6b5   : > { %v4187_v35 = vsub.f32 %v4090_v54, %v1888_v2  ;;  %v1935_v40 = vsel %vm403_vm1, %v1919_v15, 0.0 }
 0x6b6   : > { %1936 = vadd.xlane.f32.xlu0 %v1935_v40  ;;  %v1852_v41 = vpop.xlane.xlu0 %1851  ;;  %v1922_v31 = vmul.f32 %v4190_v3, %v4190_v3 }
 0x6b7   : > { %v1891_v38 = vmul.f32 0.03125, %v1852_v41  ;;  %v1920_v24 = vmul.f32 %v4187_v35, %v4187_v35 }
 0x6b8   : > { %v1855_v4 = vpop.xlane.xlu1 %1854  ;;  %v1944_v48 = vsel %vm403_vm1, %v1922_v31, 0.0 }
 0x6b9   : > { %v1892_v63 = vmul.f32 0.03125, %v1855_v4  ;;  %v4199_v54 = vsub.f32 %v4107_v7, %v1891_v38  ;;  %v1938_v18 = vsel %vm403_vm1, %v1920_v24, 0.0 }
 0x6ba   : > { %1942 = vadd.xlane.f32.xlu0 %v1941_v6  ;;  %1939 = vadd.xlane.f32.xlu1 %v1938_v18  ;;  %v1858_v8 = vpop.xlane.xlu0 %1857 }
 0x6bb   : > { %v4202_v11 = vsub.f32 %v4110_v42, %v1892_v63  ;;  %v1893_v34 = vmul.f32 0.03125, %v1858_v8  ;;  %v1923_v47 = vmul.f32 %v4199_v54, %v4199_v54 }
 0x6bc   : > { %v1861_v9 = vpop.xlane.xlu1 %1860 }
 0x6bd   : > { %v1894_v27 = vmul.f32 0.03125, %v1861_v9  ;;  %v1924_v7 = vmul.f32 %v4202_v11, %v4202_v11  ;;  %v4211_v49 = vsub.f32 %v4119_v60, %v1893_v34  ;;  %v1947_v44 = vsel %vm403_vm1, %v1923_v47, 0.0 }
 0x6be   : > { %1945 = vadd.xlane.f32.xlu1 %v1944_v48  ;;  %1948 = vadd.xlane.f32.xlu0 %v1947_v44  ;;  %v1864_v39 = vpop.xlane.xlu0 %1863 }
 0x6bf   : > { %v4214_v42 = vsub.f32 %v4122_v22, %v1894_v27  ;;  %v1950_v32 = vsel %vm403_vm1, %v1924_v7, 0.0  ;;  %v1895_v57 = vmul.f32 0.03125, %v1864_v39  ;;  %v1925_v25 = vmul.f32 %v4211_v49, %v4211_v49 }
 0x6c0   : > { %v1867_v17 = vpop.xlane.xlu1 %1866 }
 0x6c1   : > { %v1896_v61 = vmul.f32 0.03125, %v1867_v17  ;;  %v1926_v60 = vmul.f32 %v4214_v42, %v4214_v42  ;;  %v4223_v62 = vsub.f32 %v4131_v37, %v1895_v57  ;;  %v1953_v52 = vsel %vm403_vm1, %v1925_v25, 0.0 }
 0x6c2   : > { %1951 = vadd.xlane.f32.xlu1 %v1950_v32  ;;  %1954 = vadd.xlane.f32.xlu0 %v1953_v52  ;;  %v1870_v21 = vpop.xlane.xlu0 %1869 }
 0x6c3   : > { %v4226_v22 = vsub.f32 %v4134_v28, %v1896_v61  ;;  %v1956_v30 = vsel %vm403_vm1, %v1926_v60, 0.0  ;;  %v1897_v14 = vmul.f32 0.03125, %v1870_v21  ;;  %v1927_v46 = vmul.f32 %v4223_v62, %v4223_v62 }
 0x6c4   : > { %v1873_v0 = vpop.xlane.xlu1 %1872 }
 0x6c5   : > { %v1898_v43 = vmul.f32 0.03125, %v1873_v0  ;;  %v1928_v37 = vmul.f32 %v4226_v22, %v4226_v22  ;;  %v4235_v53 = vsub.f32 %v4143_v20, %v1897_v14  ;;  %v1959_v50 = vsel %vm403_vm1, %v1927_v46, 0.0  ;;  %v4275_v0 = vld [vmem:[%s4391_s5] ss:$0 sm:$0xff] }
 0x6c6   : > { %1957 = vadd.xlane.f32.xlu1 %v1956_v30  ;;  %1960 = vadd.xlane.f32.xlu0 %v1959_v50  ;;  %v1876_v5 = vpop.xlane.xlu0 %1875  ;;  %v4281_v50 = vld [vmem:[%s4391_s5 + $0x1] ss:$0 sm:$0xff] }
 0x6c7   : > { %v4238_v28 = vsub.f32 %v4146_v45, %v1898_v43  ;;  %v1962_v51 = vsel %vm403_vm1, %v1928_v37, 0.0  ;;  %v1899_v1 = vmul.f32 0.03125, %v1876_v5  ;;  %v1929_v19 = vmul.f32 %v4235_v53, %v4235_v53 }
 0x6c8   : > { %v1879_v26 = vpop.xlane.xlu1 %1878 }
 0x6c9   : > { %v1900_v59 = vmul.f32 0.03125, %v1879_v26  ;;  %v1930_v20 = vmul.f32 %v4238_v28, %v4238_v28  ;;  %v4247_v13 = vsub.f32 %v4155_v33, %v1899_v1  ;;  %v1965_v58 = vsel %vm403_vm1, %v1929_v19, 0.0 }
 0x6ca   : > { %1963 = vadd.xlane.f32.xlu1 %v1962_v51  ;;  %1966 = vadd.xlane.f32.xlu0 %v1965_v58  ;;  %v1882_v29 = vpop.xlane.xlu0 %1881 }
 0x6cb   : > { %v4250_v45 = vsub.f32 %v4158_v10, %v1900_v59  ;;  %v1968_v12 = vsel %vm403_vm1, %v1930_v20, 0.0  ;;  %v1901_v15 = vmul.f32 0.03125, %v1882_v29  ;;  %v1931_v40 = vmul.f32 %v4247_v13, %v4247_v13 }
 0x6cc   : > { %v1885_v2 = vpop.xlane.xlu1 %1884 }
 0x6cd   : > { %v1902_v23 = vmul.f32 0.03125, %v1885_v2  ;;  %v1932_v33 = vmul.f32 %v4250_v45, %v4250_v45  ;;  %v4259_v41 = vsub.f32 %v4167_v55, %v1901_v15  ;;  %v1971_v4 = vsel %vm403_vm1, %v1931_v40, 0.0 }
 0x6ce   : > { %1969 = vadd.xlane.f32.xlu1 %v1968_v12  ;;  %1972 = vadd.xlane.f32.xlu0 %v1971_v4 }
 0x6cf   : > { %v4262_v10 = vsub.f32 %v4170_v16, %v1902_v23  ;;  %v1974_v6 = vsel %vm403_vm1, %v1932_v33, 0.0  ;;  %v1933_v38 = vmul.f32 %v4259_v41, %v4259_v41 }
 0x6d1   : > { %v1934_v63 = vmul.f32 %v4262_v10, %v4262_v10  ;;  %v1977_v24 = vsel %vm403_vm1, %v1933_v38, 0.0 }
 0x6d2   : > { %1975 = vadd.xlane.f32.xlu1 %v1974_v6  ;;  %1978 = vadd.xlane.f32.xlu0 %v1977_v24 }
 0x6d3   : > { %v1980_v55 = vsel %vm403_vm1, %v1934_v63, 0.0 }
 0x6d6   : > { %1981 = vadd.xlane.f32.xlu1 %v1980_v55 }
 0x743   : > { %v1937_v16 = vpop.xlane.xlu0 %1936 }
 0x744   : > { %v1983_v31 = vmul.f32 0.03125, %v1937_v16 }
 0x746   : > { %v1999_v18 = vadd.f32 1e-12, %v1983_v31 }
 0x747   : > { %v1940_v8 = vpop.xlane.xlu1 %1939  ;;  %v1943_v9 = vpop.xlane.xlu0 %1942 }
 0x748   : > { %3038 = vrsqrt.f32 %v1999_v18  ;;  %v1984_v48 = vmul.f32 0.03125, %v1940_v8  ;;  %v1985_v34 = vmul.f32 0.03125, %v1943_v9 }
 0x74a   : > { %v2000_v27 = vadd.f32 1e-12, %v1984_v48  ;;  %v2001_v47 = vadd.f32 1e-12, %v1985_v34 }
 0x74b   : > { %v1946_v7 = vpop.xlane.xlu1 %1945  ;;  %v1949_v44 = vpop.xlane.xlu0 %1948 }
 0x74c   : > { %3040 = vrsqrt.f32 %v2000_v27  ;;  %v1986_v39 = vmul.f32 0.03125, %v1946_v7  ;;  %v1987_v17 = vmul.f32 0.03125, %v1949_v44 }
 0x74d   : > { %3042 = vrsqrt.f32 %v2001_v47 }
 0x74e   : > { %v2002_v32 = vadd.f32 1e-12, %v1986_v39  ;;  %v2003_v57 = vadd.f32 1e-12, %v1987_v17 }
 0x74f   : > { %v1952_v61 = vpop.xlane.xlu1 %1951  ;;  %v1955_v25 = vpop.xlane.xlu0 %1954 }
 0x750   : > { %3044 = vrsqrt.f32 %v2002_v32  ;;  %v1988_v60 = vmul.f32 0.03125, %v1952_v61  ;;  %v1989_v52 = vmul.f32 0.03125, %v1955_v25 }
 0x751   : > { %3046 = vrsqrt.f32 %v2003_v57 }
 0x752   : > { %v3039_v21 = vpop.eup %3038  ;;  %v2004_v30 = vadd.f32 1e-12, %v1988_v60  ;;  %v2005_v14 = vadd.f32 1e-12, %v1989_v52 }
 0x753   : > { %v2031_v43 = vmul.f32 %v3039_v21, %v4177_v36  ;;  %v1958_v46 = vpop.xlane.xlu1 %1957  ;;  %v1961_v37 = vpop.xlane.xlu0 %1960 }
 0x754   : > { %3048 = vrsqrt.f32 %v2004_v30  ;;  %v1990_v5 = vmul.f32 0.03125, %v1958_v46  ;;  %v1991_v26 = vmul.f32 0.03125, %v1961_v37 }
 0x755   : > { %v2052_v51 = vmul.f32 %v4275_v0, %v2031_v43  ;;  %3050 = vrsqrt.f32 %v2005_v14 }
 0x756   : > { %v3041_v1 = vpop.eup %3040  ;;  %v2006_v59 = vadd.f32 1e-12, %v1990_v5  ;;  %v2007_v19 = vadd.f32 1e-12, %v1991_v26 }
 0x757   : > { %v3043_v20 = vpop.eup %3042  ;;  %v2073_v36 = vadd.f32 %v4281_v50, %v2052_v51  ;;  %v2032_v58 = vmul.f32 %v3041_v1, %v4187_v35  ;;  %v1964_v29 = vpop.xlane.xlu1 %1963 }
 0x758   : > { %v1967_v2 = vpop.xlane.xlu0 %1966  ;;  %v2033_v12 = vmul.f32 %v3043_v20, %v4180_v56  ;;  %3052 = vrsqrt.f32 %v2006_v59  ;;  %v1992_v15 = vmul.f32 0.03125, %v1964_v29 }
 0x759   : > { %v1993_v23 = vmul.f32 0.03125, %v1967_v2  ;;  %2089 = vst.msk [vmem:[%s3347_s25] sm:$0xff] %vm403_vm1, %v2073_v36  ;;  %v2053_v40 = vmul.f32 %v4275_v0, %v2032_v58  ;;  %3054 = vrsqrt.f32 %v2007_v19 }
 0x75a   : > { %v3045_v33 = vpop.eup %3044  ;;  %v2054_v4 = vmul.f32 %v4275_v0, %v2033_v12  ;;  %v2008_v6 = vadd.f32 1e-12, %v1992_v15 }
 0x75b   : > { %v2009_v38 = vadd.f32 1e-12, %v1993_v23  ;;  %v3047_v35 = vpop.eup %3046  ;;  %v2074_v63 = vadd.f32 %v4281_v50, %v2053_v40  ;;  %v2034_v56 = vmul.f32 %v3045_v33, %v4190_v3  ;;  %v1970_v24 = vpop.xlane.xlu1 %1969 }
 0x75c   : > { %v1973_v55 = vpop.xlane.xlu0 %1972  ;;  %v2075_v16 = vadd.f32 %v4281_v50, %v2054_v4  ;;  %v2035_v31 = vmul.f32 %v3047_v35, %v4199_v54  ;;  %3056 = vrsqrt.f32 %v2008_v6  ;;  %v1994_v18 = vmul.f32 0.03125, %v1970_v24 }
 0x75d   : > { %2090 = vst.msk [vmem:[%s3347_s25 + $0x8] sm:$0xff] %vm403_vm1, %v2074_v63  ;;  %v2055_v8 = vmul.f32 %v4275_v0, %v2034_v56  ;;  %3058 = vrsqrt.f32 %v2009_v38  ;;  %v1995_v9 = vmul.f32 0.03125, %v1973_v55 }
 0x75e   : > { %v3049_v48 = vpop.eup %3048  ;;  %2091 = vst.msk [vmem:[%s3347_s25 + $0x10] sm:$0xff] %vm403_vm1, %v2075_v16  ;;  %v2056_v3 = vmul.f32 %v4275_v0, %v2035_v31  ;;  %v2010_v34 = vadd.f32 1e-12, %v1994_v18 }
 0x75f   : > { %v3051_v27 = vpop.eup %3050  ;;  %v2076_v47 = vadd.f32 %v4281_v50, %v2055_v8  ;;  %v2036_v54 = vmul.f32 %v3049_v48, %v4202_v11  ;;  %v2011_v7 = vadd.f32 1e-12, %v1995_v9  ;;  %v1976_v44 = vpop.xlane.xlu1 %1975 }
 0x760   : > { %v1979_v39 = vpop.xlane.xlu0 %1978  ;;  %v2077_v17 = vadd.f32 %v4281_v50, %v2056_v3  ;;  %v2037_v32 = vmul.f32 %v3051_v27, %v4211_v49  ;;  %3060 = vrsqrt.f32 %v2010_v34  ;;  %v1996_v57 = vmul.f32 0.03125, %v1976_v44 }
 0x761   : > { %2092 = vst.msk [vmem:[%s3347_s25 + $0x18] sm:$0xff] %vm403_vm1, %v2076_v47  ;;  %v2057_v61 = vmul.f32 %v4275_v0, %v2036_v54  ;;  %3062 = vrsqrt.f32 %v2011_v7  ;;  %v1997_v25 = vmul.f32 0.03125, %v1979_v39 }
 0x762   : > { %v3053_v60 = vpop.eup %3052  ;;  %2093 = vst.msk [vmem:[%s3347_s25 + $0x20] sm:$0xff] %vm403_vm1, %v2077_v17  ;;  %v2058_v11 = vmul.f32 %v4275_v0, %v2037_v32  ;;  %v2012_v52 = vadd.f32 1e-12, %v1996_v57 }
 0x763   : > { %v3055_v21 = vpop.eup %3054  ;;  %v2078_v30 = vadd.f32 %v4281_v50, %v2057_v61  ;;  %v2038_v49 = vmul.f32 %v3053_v60, %v4214_v42  ;;  %v2013_v14 = vadd.f32 1e-12, %v1997_v25  ;;  %v1982_v43 = vpop.xlane.xlu1 %1981 }
 0x764   : > { %v2079_v46 = vadd.f32 %v4281_v50, %v2058_v11  ;;  %v2039_v37 = vmul.f32 %v3055_v21, %v4223_v62  ;;  %3064 = vrsqrt.f32 %v2012_v52  ;;  %v1998_v5 = vmul.f32 0.03125, %v1982_v43 }
 0x765   : > { %2094 = vst.msk [vmem:[%s3347_s25 + $0x28] sm:$0xff] %vm403_vm1, %v2078_v30  ;;  %v2059_v26 = vmul.f32 %v4275_v0, %v2038_v49  ;;  %3066 = vrsqrt.f32 %v2013_v14 }
 0x766   : > { %v3057_v51 = vpop.eup %3056  ;;  %2095 = vst.msk [vmem:[%s3347_s25 + $0x30] sm:$0xff] %vm403_vm1, %v2079_v46  ;;  %v2060_v42 = vmul.f32 %v4275_v0, %v2039_v37  ;;  %v2014_v1 = vadd.f32 1e-12, %v1998_v5 }
 0x767   : > { %v3059_v59 = vpop.eup %3058  ;;  %v2080_v19 = vadd.f32 %v4281_v50, %v2059_v26  ;;  %v2040_v62 = vmul.f32 %v3057_v51, %v4226_v22 }
 0x768   : > { %v2081_v20 = vadd.f32 %v4281_v50, %v2060_v42  ;;  %v2041_v36 = vmul.f32 %v3059_v59, %v4235_v53  ;;  %3068 = vrsqrt.f32 %v2014_v1 }
 0x769   : > { %2096 = vst.msk [vmem:[%s3347_s25 + $0x38] sm:$0xff] %vm403_vm1, %v2080_v19  ;;  %v2061_v58 = vmul.f32 %v4275_v0, %v2040_v62 }
 0x76a   : > { %v3061_v29 = vpop.eup %3060  ;;  %2097 = vst.msk [vmem:[%s3347_s25 + $0x40] sm:$0xff] %vm403_vm1, %v2081_v20  ;;  %v2062_v2 = vmul.f32 %v4275_v0, %v2041_v36 }
 0x76b   : > { %v3063_v12 = vpop.eup %3062  ;;  %v2082_v15 = vadd.f32 %v4281_v50, %v2061_v58  ;;  %v2042_v22 = vmul.f32 %v3061_v29, %v4238_v28 }
 0x76c   : > { %v2083_v23 = vadd.f32 %v4281_v50, %v2062_v2  ;;  %v2043_v53 = vmul.f32 %v3063_v12, %v4247_v13 }
 0x76d   : > { %2098 = vst.msk [vmem:[%s3347_s25 + $0x48] sm:$0xff] %vm403_vm1, %v2082_v15  ;;  %v2063_v40 = vmul.f32 %v4275_v0, %v2042_v22 }
 0x76e   : > { %v3065_v33 = vpop.eup %3064  ;;  %2099 = vst.msk [vmem:[%s3347_s25 + $0x50] sm:$0xff] %vm403_vm1, %v2083_v23  ;;  %v2064_v4 = vmul.f32 %v4275_v0, %v2043_v53 }
 0x76f   : > { %v3067_v6 = vpop.eup %3066  ;;  %v2084_v38 = vadd.f32 %v4281_v50, %v2063_v40  ;;  %v2044_v28 = vmul.f32 %v3065_v33, %v4250_v45 }
 0x770   : > { %v2085_v35 = vadd.f32 %v4281_v50, %v2064_v4  ;;  %v2045_v13 = vmul.f32 %v3067_v6, %v4259_v41 }
 0x771   : > { %2100 = vst.msk [vmem:[%s3347_s25 + $0x58] sm:$0xff] %vm403_vm1, %v2084_v38  ;;  %v2065_v63 = vmul.f32 %v4275_v0, %v2044_v28 }
 0x772   : > { %v3069_v56 = vpop.eup %3068  ;;  %2101 = vst.msk [vmem:[%s3347_s25 + $0x60] sm:$0xff] %vm403_vm1, %v2085_v35  ;;  %v2066_v24 = vmul.f32 %v4275_v0, %v2045_v13 }
 0x773   : > { %v2086_v55 = vadd.f32 %v4281_v50, %v2065_v63  ;;  %v2046_v16 = vmul.f32 %v3069_v56, %v4262_v10 }
 0x774   : > { %v2087_v31 = vadd.f32 %v4281_v50, %v2066_v24 }
 0x775   : > { %2102 = vst.msk [vmem:[%s3347_s25 + $0x68] sm:$0xff] %vm403_vm1, %v2086_v55  ;;  %v2067_v45 = vmul.f32 %v4275_v0, %v2046_v16 }
 0x776   : > { %2103 = vst.msk [vmem:[%s3347_s25 + $0x70] sm:$0xff] %vm403_vm1, %v2087_v31 }
 0x777   : > { %v2088_v41 = vadd.f32 %v4281_v50, %v2067_v45 }
 0x779   : > { %2104 = vst.msk [vmem:[%s3347_s25 + $0x78] sm:$0xff] %vm403_vm1, %v2088_v41 }
 0x77a PF: > { %s19_s28 = sadd.s32 1, %s3166_s28   ;;  %s4429_s9 = sld [smem:[#allocation5_spill]] }
 0x77b   : > { %p16_p7 = scmp.ge.s32.totalorder %s19_s28, 6   ;;  %s4430_s21 = smov %s3142_s22 }
 0x77c   : > { %s4431_s22 = smov %s3146_s23  ;;  %s4432_s23 = smov %s3268_s11 }
 0x77d   : > { %s4433_s24 = smov %s3158_s26  ;;  %s4434_s25 = smov %s3162_s27 }
 0x77e   : > { %s4435_s26 = smov %s4438_s30  ;;  %18 = sbr.rel (!%p16_p7) target bundleno = 7 (0x7), region = 104 }
 0x780   : > { %s4436_s27 = smov %s4429_s9 }
 0x785   :  { %2126 = vsyncpa [#allocation3], 1 }
 0x786   :  { %2128 = vsyncpa [#allocation3 + $0x1], 1 }

</bundles_post_ra>
